<compile_context>
chip_gen: v6e
topology: v6e:2x2x1
jax: 0.10.0
libtpu: 0.0.40
codegen_flags: <defaults>
</compile_context>

<pallas_src>
import functools

import jax
import jax.numpy as jnp
from jax.experimental import pallas as pl
from jax.experimental.pallas import tpu as pltpu

INPUT_SIZE = 784
HIDDEN_SIZE = 500
NUM_CLASSES = 10

HIDDEN_PAD = 512   # 500 -> 512: multiple of 128 lanes (no masked tail)
CLASS_PAD = 128    # 10 -> 128: unmasked, lane-dense output stores


def _round_up(n, m):
    return (n + m - 1) // m * m


def _pick_tb(batch):
    """Batch-tile heuristic: big tiles for big batches, >=4 grid steps when we can."""
    if batch >= 4096:
        return 512
    if batch >= 1024:
        return 256
    # Mid/small batches: tb=128 keeps >=4 steps at B>=512 (2 pipelined steps
    # per v7x TensorCore); tiny batches get a single right-sized block.
    return max(8, min(128, _round_up(batch, 8)))


def mlp_kernel(x_ref, w1_ref, b1_ref, w2_ref, b2_ref, o_ref):
    # Layer 1: (TB, 784)f32 -> bf16 (VPU cast) @ (784, 512)bf16 -> f32 acc, +b, ReLU.
    xb = x_ref[...].astype(jnp.bfloat16)
    h = jnp.dot(xb, w1_ref[...], preferred_element_type=jnp.float32)
    h = jnp.maximum(h + b1_ref[...], 0.0)
    # Layer 2: (TB, 512)bf16 @ (512, 128)bf16 -> f32 acc, +b.
    out = jnp.dot(h.astype(jnp.bfloat16), w2_ref[...],
                  preferred_element_type=jnp.float32)
    o_ref[...] = out + b2_ref[...]


def prepare_params(w1, b1, w2, b2):
    """Zero-pad hidden 500->512 and classes 10->128; cast weights to bf16.

    Padding is numerically inert: padded W1 cols / b1 lanes are 0 (ReLU(0)=0)
    and the corresponding W2 rows / b2 lanes are 0, so they contribute nothing.
    """
    w1p = jnp.zeros((INPUT_SIZE, HIDDEN_PAD), jnp.bfloat16)
    w1p = w1p.at[:, :HIDDEN_SIZE].set(w1.astype(jnp.bfloat16))
    b1p = jnp.zeros((1, HIDDEN_PAD), jnp.float32).at[:, :HIDDEN_SIZE].set(b1)
    w2p = jnp.zeros((HIDDEN_PAD, CLASS_PAD), jnp.bfloat16)
    w2p = w2p.at[:HIDDEN_SIZE, :NUM_CLASSES].set(w2.astype(jnp.bfloat16))
    b2p = jnp.zeros((1, CLASS_PAD), jnp.float32).at[:, :NUM_CLASSES].set(b2)
    return w1p, b1p, w2p, b2p


@jax.jit
def mlp_forward(x, w1p, b1p, w2p, b2p):
    """x: (B, INPUT_SIZE) f32.  Padded/bf16 params from prepare_params."""
    B = x.shape[0]
    tb = _pick_tb(B)
    grid = (pl.cdiv(B, tb),)

    n_rows = grid[0] * tb
    flops = 2 * n_rows * (INPUT_SIZE * HIDDEN_PAD + HIDDEN_PAD * CLASS_PAD)
    bytes_accessed = (
        x.size * 4                      # x streamed once, f32
        + w1p.size * 2 + w2p.size * 2   # resident bf16 weights
        + b1p.size * 4 + b2p.size * 4
        + B * CLASS_PAD * 4             # f32 output writeback
    )

    out = pl.pallas_call(
        mlp_kernel,
        out_shape=jax.ShapeDtypeStruct((B, CLASS_PAD), jnp.float32),
        grid=grid,
        in_specs=[
            # x: tiled on batch, f32 straight from HBM (cast to bf16 in-kernel).
            pl.BlockSpec((tb, INPUT_SIZE), lambda i: (i, 0)),
            pl.BlockSpec((INPUT_SIZE, HIDDEN_PAD), lambda i: (0, 0)),  # W1: resident
            pl.BlockSpec((1, HIDDEN_PAD), lambda i: (0, 0)),           # b1: resident
            pl.BlockSpec((HIDDEN_PAD, CLASS_PAD), lambda i: (0, 0)),   # W2: resident
            pl.BlockSpec((1, CLASS_PAD), lambda i: (0, 0)),            # b2: resident
        ],
        out_specs=pl.BlockSpec((tb, CLASS_PAD), lambda i: (i, 0)),
        compiler_params=pltpu.CompilerParams(
            dimension_semantics=("parallel",),   # megacore sharding on v7x
            vmem_limit_bytes=32 << 20,           # headroom for f32 x tiles + h scratch
        ),
        cost_estimate=pl.CostEstimate(
            flops=flops, bytes_accessed=bytes_accessed, transcendentals=0),
    )(x, w1p, b1p, w2p, b2p)

    return out[:, :NUM_CLASSES]


def init_params(key):
    """Deterministic init mirroring nn.Linear's uniform(-1/sqrt(fan_in), 1/sqrt(fan_in))."""
    k1, k2, k3, k4 = jax.random.split(key, 4)
    bound1 = 1.0 / jnp.sqrt(float(INPUT_SIZE))
    bound2 = 1.0 / jnp.sqrt(float(HIDDEN_SIZE))
    # Stored transposed relative to PyTorch (out, in) -> (in, out) for x @ W.
    w1 = jax.random.uniform(k1, (INPUT_SIZE, HIDDEN_SIZE), jnp.float32, -bound1, bound1)
    b1 = jax.random.uniform(k2, (1, HIDDEN_SIZE), jnp.float32, -bound1, bound1)
    w2 = jax.random.uniform(k3, (HIDDEN_SIZE, NUM_CLASSES), jnp.float32, -bound2, bound2)
    b2 = jax.random.uniform(k4, (1, NUM_CLASSES), jnp.float32, -bound2, bound2)
    return w1, b1, w2, b2


def reference_forward_bf16(x, w1, b1, w2, b2):
    """Reference with the same bf16 casts / f32 accumulation as the kernel."""
    xb = x.astype(jnp.bfloat16).astype(jnp.float32)
    w1f = w1.astype(jnp.bfloat16).astype(jnp.float32)
    w2f = w2.astype(jnp.bfloat16).astype(jnp.float32)
    h = jnp.maximum(xb @ w1f + b1, 0.0)
    return h.astype(jnp.bfloat16).astype(jnp.float32) @ w2f + b2


if __name__ == "__main__":
    key = jax.random.PRNGKey(0)
    kx, kp = jax.random.split(key)

    # 200 rows: not a multiple of tb=128 -> exercises the ragged (cdiv) last block.
    batch = 200
    x = jax.random.normal(kx, (batch, INPUT_SIZE), jnp.float32)
    w1, b1, w2, b2 = init_params(kp)
    w1p, b1p, w2p, b2p = prepare_params(w1, b1, w2, b2)

    out = mlp_forward(x, w1p, b1p, w2p, b2p)
    out = jax.block_until_ready(out)

    ref = reference_forward_bf16(x, w1, b1, w2, b2)
    assert out.shape == (batch, NUM_CLASSES)
    assert jnp.allclose(out, ref, atol=2e-2, rtol=2e-2), "mismatch vs reference"
    print("KERNEL_OK")
</pallas_src>

<mosaic_0001>
module attributes {stable_mosaic.version = 11 : i64} {
  func.func @mlp_kernel(%arg0: i32, %arg1: memref<128x784xf32, #tpu.memory_space<vmem>>, %arg2: memref<784x512xbf16, #tpu.memory_space<vmem>>, %arg3: memref<1x512xf32, #tpu.memory_space<vmem>>, %arg4: memref<512x128xbf16, #tpu.memory_space<vmem>>, %arg5: memref<1x128xf32, #tpu.memory_space<vmem>>, %arg6: memref<128x128xf32, #tpu.memory_space<vmem>>) attributes {dimension_semantics = [#tpu.dimension_semantics<parallel>], iteration_bounds = array<i64: 2>, scalar_prefetch = 0 : i64, scratch_operands = 0 : i64, tpu.core_type = #tpu.core_type<tc>, window_params = [{transform_indices = @transform_0, window_bounds = array<i64: 128, 784>}, {pipeline_mode = #tpu.pipeline_mode<synchronous>, transform_indices = @transform_1, window_bounds = array<i64: 784, 512>}, {pipeline_mode = #tpu.pipeline_mode<synchronous>, transform_indices = @transform_2, window_bounds = array<i64: 1, 512>}, {pipeline_mode = #tpu.pipeline_mode<synchronous>, transform_indices = @transform_3, window_bounds = array<i64: 512, 128>}, {pipeline_mode = #tpu.pipeline_mode<synchronous>, transform_indices = @transform_4, window_bounds = array<i64: 1, 128>}, {transform_indices = @transform_5, window_bounds = array<i64: 128, 128>}]} {
    %c0 = arith.constant 0 : index
    %c0_0 = arith.constant 0 : index
    %0 = vector.load %arg1[%c0, %c0_0] : memref<128x784xf32, #tpu.memory_space<vmem>>, vector<128x784xf32>
    %1 = arith.truncf %0 : vector<128x784xf32> to vector<128x784xbf16>
    %c0_1 = arith.constant 0 : index
    %c0_2 = arith.constant 0 : index
    %2 = vector.load %arg2[%c0_1, %c0_2] : memref<784x512xbf16, #tpu.memory_space<vmem>>, vector<784x512xbf16>
    %cst = arith.constant dense<0.000000e+00> : vector<128x512xf32>
    %3 = tpu.matmul %1, %2, %cst {dimension_numbers = #tpu.dot_dimension_numbers<[1], [0], [0], [1], [0, 0, 1, 1], [], []>} : vector<128x784xbf16>, vector<784x512xbf16>, vector<128x512xf32> -> vector<128x512xf32>
    %c0_3 = arith.constant 0 : index
    %c0_4 = arith.constant 0 : index
    %4 = vector.load %arg3[%c0_3, %c0_4] : memref<1x512xf32, #tpu.memory_space<vmem>>, vector<1x512xf32>
    %5 = vector.broadcast %4 : vector<1x512xf32> to vector<128x512xf32>
    %6 = arith.addf %3, %5 : vector<128x512xf32>
    %cst_5 = arith.constant 0.000000e+00 : f32
    %7 = vector.broadcast %cst_5 : f32 to vector<128x512xf32>
    %8 = arith.maximumf %6, %7 : vector<128x512xf32>
    %9 = arith.truncf %8 : vector<128x512xf32> to vector<128x512xbf16>
    %c0_6 = arith.constant 0 : index
    %c0_7 = arith.constant 0 : index
    %10 = vector.load %arg4[%c0_6, %c0_7] : memref<512x128xbf16, #tpu.memory_space<vmem>>, vector<512x128xbf16>
    %cst_8 = arith.constant dense<0.000000e+00> : vector<128x128xf32>
    %11 = tpu.matmul %9, %10, %cst_8 {dimension_numbers = #tpu.dot_dimension_numbers<[1], [0], [0], [1], [0, 0, 1, 1], [], []>} : vector<128x512xbf16>, vector<512x128xbf16>, vector<128x128xf32> -> vector<128x128xf32>
    %c0_9 = arith.constant 0 : index
    %c0_10 = arith.constant 0 : index
    %12 = vector.load %arg5[%c0_9, %c0_10] : memref<1x128xf32, #tpu.memory_space<vmem>>, vector<1x128xf32>
    %13 = vector.broadcast %12 : vector<1x128xf32> to vector<128x128xf32>
    %14 = arith.addf %11, %13 : vector<128x128xf32>
    %c0_11 = arith.constant 0 : index
    %c0_12 = arith.constant 0 : index
    %15 = vector.load %arg6[%c0_11, %c0_12] : memref<128x128xf32, #tpu.memory_space<vmem>>, vector<128x128xf32>
    tpu.vector_store %arg6[%c0_11, %c0_12], %14 {strides = array<i32>} : memref<128x128xf32, #tpu.memory_space<vmem>>, vector<128x128xf32>,
    return
  }
  func.func @transform_0(%arg0: i32) -> (i32, i32) {
    %c0_i32 = arith.constant 0 : i32
    %c0_i32_0 = arith.constant 0 : i32
    return %arg0, %c0_i32 : i32, i32
  }
  func.func @transform_1(%arg0: i32) -> (i32, i32) {
    %c0_i32 = arith.constant 0 : i32
    %c0_i32_0 = arith.constant 0 : i32
    %c0_i32_1 = arith.constant 0 : i32
    return %c0_i32, %c0_i32_0 : i32, i32
  }
  func.func @transform_2(%arg0: i32) -> (i32, i32) {
    %c0_i32 = arith.constant 0 : i32
    %c0_i32_0 = arith.constant 0 : i32
    %c0_i32_1 = arith.constant 0 : i32
    return %c0_i32, %c0_i32_0 : i32, i32
  }
  func.func @transform_3(%arg0: i32) -> (i32, i32) {
    %c0_i32 = arith.constant 0 : i32
    %c0_i32_0 = arith.constant 0 : i32
    %c0_i32_1 = arith.constant 0 : i32
    return %c0_i32, %c0_i32_0 : i32, i32
  }
  func.func @transform_4(%arg0: i32) -> (i32, i32) {
    %c0_i32 = arith.constant 0 : i32
    %c0_i32_0 = arith.constant 0 : i32
    %c0_i32_1 = arith.constant 0 : i32
    return %c0_i32, %c0_i32_0 : i32, i32
  }
  func.func @transform_5(%arg0: i32) -> (i32, i32) {
    %c0_i32 = arith.constant 0 : i32
    %c0_i32_0 = arith.constant 0 : i32
    return %arg0, %c0_i32 : i32, i32
  }
}

</mosaic_0001>

<bundles_post_ra>
// kernel: mlp_forward.1
= control target key start
LH: loop header
LB: loop body
LE: loop exit
PB: predicated region body
PF: predicated region fallthrough
CT: control target
= control target key end

     0   :  { %10 = vsyncpa [#allocation3], 0  ;;  %s5650_s0 = inlined_call_operand.hbm [shape: f32[200,784], index: 0, kind: input, shape index: {}]   ;;  %s5651_s1 = inlined_call_operand.hbm [shape: bf16[784,512], index: 1, kind: input, shape index: {}]   ;;  %s5652_s2 = inlined_call_operand.hbm [shape: f32[1,512], index: 2, kind: input, shape index: {}]   ;;  %s5653_s3 = inlined_call_operand.hbm [shape: bf16[512,128], index: 3, kind: input, shape index: {}]   ;;  %s5654_s4 = inlined_call_operand.vmem [shape: f32[1,128], index: 4, kind: input, shape index: {}]   ;;  %s5655_s5 = inlined_call_operand.vmem [shape: f32[200,128], index: 5, kind: output, shape index: {}]  }
   0x1   :  { %12 = vsyncpa [#allocation3 + $0x1], 0 }
   0x2   :  { %13 = vsyncpa [#allocation5], 0 }
   0x3   :  { %14 = vsyncpa [#allocation8], 0  ;;  %s4609_s18 = smov 0   ;;  %s4611_s19 = smov 0  }
   0x4   :  { %s4613_s20 = smov 0   ;;  %s4615_s21 = smov 0  }
   0x5 LB: > { %s4628_s22 = sadd.s32 4294967295, %s4534_s21   ;;  %s4631_s23 = sadd.s32 1, %s4534_s21   ;;  %s4534_s21 = sphi %s4615_s21, %s5743_s21   ;;  %s4530_s20 = sphi %s4613_s20, %s5742_s20   ;;  %s4526_s19 = sphi %s4611_s19, %s5741_s19   ;;  %s4522_s18 = sphi %s4609_s18, %s5740_s18  }
   0x6   : > { %s24_s24 = ssub.s32 %s4534_s21, %s4631_s23  ;;  %s27_s25 = sadd.s32 1, %s4530_s20 }
   0x7   : > { %p25_p0 = scmp.eq.s32.totalorder %s24_s24, 0  ;;  %p34_p1 = scmp.ne.s32.totalorder %s4530_s20, %s4526_s19 }
   0x8   : > { %p35_p2 = scmp.eq.s32.totalorder %s4534_s21, 0  ;;  %p40_p3 = scmp.ne.s32.totalorder %s4526_s19, %s4522_s18 }
   0x9   : > { %s4641_s26 = scalar_select %p25_p0, %s4530_s20, %s27_s25  }
   0xa   : > { %p4643_p4 = por %p35_p2, %p34_p1  ;;  %p5656_p5 = scmp.eq.s32.totalorder %s4628_s22, 0 }
   0xb   : > { %p148_p6 = scmp.eq.s32.totalorder %s4628_s22, 1  ;;  %p3482_p7 = scmp.ge.s32.totalorder %s4534_s21, 1 }
   0xc   : > { %p4652_p8 = por %p5656_p5, %p40_p3  ;;  %p161_p9 = scmp.lt.s32.totalorder %s4534_s21, 3 }
   0xd   : > { %p4657_p10 = por %p148_p6, %p34_p1  ;;  %s4568_s6 = smov [#allocation4]  }
   0xe   : > { %s5677_s28 = scalar_select %p4652_p8, 1, 0 }
   0xf   : > { %s5678_s29 = scalar_select %p4657_p10, 1, 0 }
  0x10   : > { %p4661_p11 = pnand %p3482_p7, %p161_p9  ;;  %s173_s7 = sshll.u32 %s4568_s6, 4  ;;  %s174_s7 = int_to_ptr.vmem [resolvable:$true] %s173_s7 }
  0x11   : > { %s4569_s9 = smov [#allocation6]   ;;  %s4570_s11 = smov [#allocation7]  }
  0x12   : > { %s5679_s30 = scalar_select %p4661_p11, 1, 0 }
  0x13   : > { %p3908_p12 = pneg %p4661_p11  ;;  %s187_s10 = sshll.u32 %s4569_s9, 4  ;;  %s188_s10 = int_to_ptr.vmem [resolvable:$true] %s187_s10 }
  0x14   : > { %s197_s12 = sshll.u32 %s4570_s11, 4  ;;  %s4367_s13 = scalar_lea.vmem %s174_s7, 25088  ;;  %s198_s12 = int_to_ptr.vmem [resolvable:$true] %s197_s12 }
  0x15   : > { %p4669_p13 = pnand %p3908_p12, %p5656_p5  ;;  %p4368_p1 = scmp.ne.s32.totalorder %s174_s7, %s4367_s13 }
  0x16   : > { %p4375_p6 = scmp.lt.s32.totalorder %s174_s7, %s174_s7  ;;  %p4376_p7 = scmp.lt.s32.totalorder %s4367_s13, %s4367_s13 }
  0x17   : > { %p4358_p0 = pneg %p4669_p13 }
  0x18   : > { %p4377_p9 = por %p4376_p7, %p4375_p6 }
  0x19   : > { %p4370_p2 = pnand %p4368_p1, %p4358_p0 }
  0x1b   : > { %p4371_p3 = pneg %p4370_p2 }
  0x1d   : > { %p4378_p12 = pnand %p4377_p9, %p4371_p3 }
  0x1f   : > { %4381 = shalt.err (!%p4378_p12)
}
  0x20   : > { %s4571_s14 = smov 256   ;;  %s4572_s15 = smov 16  }
  0x21   : > { %3911 = dma.hbm_to_vmem [thread:$0]  (!%p4669_p13), %s5651_s1, 25088, %s174_s7, [#allocation5], %s4571_s14, %s4571_s14, %s4572_s15  }
  0x22   : > { %s4393_s18 = scalar_lea.vmem %s188_s10, 64  ;;  %p4401_p10 = scmp.lt.s32.totalorder %s188_s10, %s188_s10 }
  0x23   : > { %p4394_p5 = scmp.ne.s32.totalorder %s188_s10, %s4393_s18  ;;  %p4402_p8 = scmp.lt.s32.totalorder %s4393_s18, %s4393_s18 }
  0x25   : > { %p4396_p1 = pnand %p4394_p5, %p4358_p0  ;;  %p4403_p6 = por %p4402_p8, %p4401_p10 }
  0x27   : > { %p4397_p2 = pneg %p4396_p1 }
  0x29   : > { %p4404_p3 = pnand %p4403_p6, %p4397_p2 }
  0x2b   : > { %4407 = shalt.err (!%p4404_p3)
}
  0x2c   : > { %3914 = dma.hbm_to_vmem [thread:$0]  (!%p4669_p13), %s5652_s2, 64, %s188_s10, [#allocation5]  }
  0x2d   : > { %s4419_s6 = scalar_lea.vmem %s198_s12, 4096  ;;  %p4427_p12 = scmp.lt.s32.totalorder %s198_s12, %s198_s12 }
  0x2e   : > { %p4420_p7 = scmp.ne.s32.totalorder %s198_s12, %s4419_s6  ;;  %p4428_p1 = scmp.lt.s32.totalorder %s4419_s6, %s4419_s6 }
  0x30   : > { %p4422_p9 = pnand %p4420_p7, %p4358_p0  ;;  %p4429_p11 = por %p4428_p1, %p4427_p12 }
  0x32   : > { %p4423_p5 = pneg %p4422_p9 }
  0x34   : > { %p4430_p8 = pnand %p4429_p11, %p4423_p5 }
  0x36   : > { %4433 = shalt.err (!%p4430_p8)
}
  0x37   : > { %s4573_s7 = smov 64   ;;  %s4574_s9 = smov 4  }
  0x38   : > { %3917 = dma.hbm_to_vmem [thread:$0]  (!%p4669_p13), %s5653_s3, 4096, %s198_s12, [#allocation8], %s4573_s7, %s4573_s7, %s4574_s9  }
  0x39   : > { %p3486_p10 = scmp.ge.s32.totalorder %s4534_s21, 2 }
  0x3b   : > { %210 = sbr.rel (%p3486_p10) target bundleno = 98 (0x62), region = 32 }
  0x40   : > { %213 = sbr.rel (!%p4643_p4) target bundleno = 98 (0x62), region = 36  ;;  %s214_s10 = sand.u32 (%p4643_p4), 1, %s4530_s20  }
  0x41   : > { %s3487_s14 = sshll.u32 (%p4643_p4), %s4534_s21, 4  ;;  %s3892_s15 = smul.u32 (%p4643_p4), 896, %s214_s10 }
  0x42   : > { %s220_s16 = ssub.s32 (%p4643_p4), 25, %s3487_s14  ;;  %s4707_s18 = scalar_lea.sflag (%p4643_p4), [#allocation3], %s214_s10 }
  0x43   : > { %p221_p11 = scmp.lt.s32.totalorder (%p4643_p4), %s220_s16, 16  ;;  %s218_s12 = scalar_lea.vmem (%p4643_p4), [#allocation2], %s3892_s15 }
  0x45   : > { %s5745_s16 = smov (!%p221_p11, %s220_s16), 16 }
  0x46   : > { %s4704_s17 = smul.u32 896, %s5745_s16 }
  0x48   : > { %s226_s8 = ssub.s32 14336, %s4704_s17 }
  0x49   : > { %227 = vsyncadd %s4707_s18, %s226_s8  ;;  %p3490_p4 = scmp.ne.s32.totalorder %s4704_s17, 0  ;;  %s3893_s27 = smul.u32 14336, %s4534_s21 }
  0x4a   : > { %s233_s24 = sshll.u32 %s218_s12, 4  ;;  %s4438_s21 = scalar_lea.hbm %s5650_s0, 22400  ;;  %s4717_s24 = int_to_ptr.vmem [resolvable:$true] %s233_s24 }
  0x4b   : > { %s4715_s7 = scalar_lea.hbm %s5650_s0, %s3893_s27 }
  0x4c   : > { %s4434_s9 = scalar_lea.hbm %s4715_s7, %s4704_s17  ;;  %p4439_p6 = scmp.lt.s32.totalorder %s4715_s7, %s5650_s0 }
  0x4d   : > { %p4435_p13 = scmp.ne.s32.totalorder %s4715_s7, %s4434_s9  ;;  %p4440_p3 = scmp.lt.s32.totalorder %s4438_s21, %s4434_s9 }
  0x4f   : > { %p4436_p0 = pnand %p4435_p13, %p3490_p4  ;;  %p4441_p7 = por %p4440_p3, %p4439_p6 }
  0x51   : > { %p4437_p2 = pneg %p4436_p0 }
  0x53   : > { %p4442_p9 = pnand %p4441_p7, %p4437_p2 }
  0x55   : > { %4445 = shalt.err (!%p4442_p9)
}
  0x56   : > { %s4446_s15 = scalar_lea.vmem %s4717_s24, %s4704_s17  ;;  %s4575_s16 = smov [#allocation2]  }
  0x57   : > { %p4447_p5 = scmp.ne.s32.totalorder %s4717_s24, %s4446_s15  ;;  %s4450_s8 = sshll.u32 %s4575_s16, 4  ;;  %s4451_s8 = int_to_ptr.vmem [resolvable:$false] %s4450_s8 }
  0x58   : > { %s4452_s12 = scalar_lea.vmem %s4451_s8, 28672  ;;  %p4453_p8 = scmp.lt.s32.totalorder %s4717_s24, %s4451_s8 }
  0x59   : > { %p4448_p12 = pnand %p4447_p5, %p3490_p4  ;;  %p4454_p10 = scmp.lt.s32.totalorder %s4452_s12, %s4446_s15 }
  0x5b   : > { %p4449_p1 = pneg %p4448_p12  ;;  %p4455_p11 = por %p4454_p10, %p4453_p8 }
  0x5d   : > { %p4456_p13 = pnand %p4455_p11, %p4449_p1 }
  0x5f   : > { %4459 = shalt.err (!%p4456_p13)
}
  0x60   : > { %s4576_s27 = smov 896   ;;  %s4577_s25 = smov 56  }
  0x61   : > { %239 = dma.hbm_to_vmem [thread:$0]  (%p3490_p4), %s4715_s7, %s4704_s17, %s4717_s24, %s4707_s18, %s4576_s27, %s4576_s27, %s4577_s25  }
  0x62 PF: > { %p5681_p0 = scmp.ne.s32.totalorder %s5679_s30, 0 }
  0x64   : > { %245 = sbr.rel (%p5681_p0) target bundleno = 882 (0x372), region = 40 }
  0x69   : > { %s4746_s6 = sand.u32 1, %s4526_s19   ;;  %p5682_p2 = scmp.ne.s32.totalorder %s5677_s28, 0 }
  0x6a   : > { %s3894_s9 = smul.u32 896, %s4746_s6  ;;  %s248_s11 = scalar_lea.sflag [#allocation3], %s4746_s6 }
  0x6c   : > { %s4750_s13 = scalar_lea.vmem [#allocation2], %s3894_s9 }
  0x6d   : > { %4509 = dma.done.wait (%p5682_p2), %s248_s11, 14336  }
  0x6e   : > { %4511 = vsyncadd (%p5682_p2), %s248_s11, 4294952960  ;;  %p5683_p4 = scmp.eq.s32.totalorder %s4628_s22, 0 }
  0x70   : > { %4513 = dma.done.wait (%p5683_p4), [#allocation5], 25152   ;;  %p5684_p6 = pmov %p5683_p4 }
  0x71   : > { %p5685_p3 = pmov %p5683_p4 }
  0x72   : > { %4515 = vsyncadd (%p5684_p6), [#allocation5], 4294942144 }
  0x73   : > { %4517 = dma.done.wait (%p5685_p3), [#allocation8], 4096   ;;  %p5686_p7 = pmov %p5685_p3 }
  0x74   : > { %v4030_v0 = vld [vmem:[#allocation4 + $0xe4] ss:$16 sps:$4 sm:$0xff]   ;;  %v4034_v2 = vld [vmem:[#allocation4 + $0xe0] ss:$16 sps:$4 sm:$0xff]   ;;  %v302_v46 = vld [vmem:[%s4750_s13 + $0x8] sm:$0xff]  ;;  %vm1667_vm0 = vcmask 130048  }
  0x75   : > { %4519 = vsyncadd (%p5686_p7), [#allocation8], 4294963200  ;;  %v4032_v1 = vld [vmem:[#allocation4 + $0x2e4] ss:$16 sps:$4 sm:$0xff]   ;;  %1692 = vmatprep.subr.bf16.mxu0 %v4030_v0  ;;  %v4035_v3 = vld [vmem:[#allocation4 + $0x2e0] ss:$16 sps:$4 sm:$0xff]  }
  0x76   : > { %1805 = vmatprep.subr.bf16.mxu1 %v4032_v1  ;;  %v4036_v4 = vld [vmem:[#allocation4 + $0xc4] ss:$16 sps:$4 sm:$0xff]   ;;  %1693 = vmatpush1.bf16.msra.mxu0 %v4034_v2  ;;  %v4040_v6 = vld [vmem:[#allocation4 + $0xc0] ss:$16 sps:$4 sm:$0xff]   ;;  %v304_v48 = vld [vmem:[%s4750_s13 + $0x18] sm:$0xff]  ;;  %s3498_s17 = sshll.u32 %s4746_s6, 7 }
  0x77   : > { %1806 = vmatpush1.bf16.msra.mxu1 %v4035_v3  ;;  %v4038_v5 = vld [vmem:[#allocation4 + $0x2c4] ss:$16 sps:$4 sm:$0xff]   ;;  %1694 = vmatprep.subr.bf16.mxu0 %v4036_v4  ;;  %v4041_v7 = vld [vmem:[#allocation4 + $0x2c0] ss:$16 sps:$4 sm:$0xff]   ;;  %s5514_s18 = scalar_lea.vmem [#allocation9], %s3498_s17   ;;  %p5736_p9 = scmp.ne.s32.totalorder %s5678_s29, 0 }
  0x78   : > { %1807 = vmatprep.subr.bf16.mxu1 %v4038_v5  ;;  %v4042_v8 = vld [vmem:[#allocation4 + $0xa4] ss:$16 sps:$4 sm:$0xff]   ;;  %v4046_v10 = vld [vmem:[#allocation4 + $0xa0] ss:$16 sps:$4 sm:$0xff]   ;;  %s3745_s24 = sshll.u32 (%p5736_p9), %s4628_s22, 4  ;;  %s3761_s7 = sshll.u32 (%p5736_p9), %s4628_s22, 7 }
  0x79   : > { %v4044_v9 = vld [vmem:[#allocation4 + $0x2a4] ss:$16 sps:$4 sm:$0xff]   ;;  %v4047_v11 = vld [vmem:[#allocation4 + $0x2a0] ss:$16 sps:$4 sm:$0xff]   ;;  %s3173_s21 = ssub.s32 (%p5736_p9), 25, %s3745_s24  ;;  %s5554_s15 = scalar_lea.vmem (%p5736_p9), %s5655_s5, %s3761_s7  }
  0x7a   : > { %1695 = vmatpush1.bf16.msra.mxu0 %v4040_v6  ;;  %v4048_v12 = vld [vmem:[#allocation4 + $0x84] ss:$16 sps:$4 sm:$0xff]   ;;  %v4052_v14 = vld [vmem:[#allocation4 + $0x80] ss:$16 sps:$4 sm:$0xff]   ;;  %p3174_p5 = scmp.lt.s32.totalorder (%p5736_p9), %s3173_s21, 16 }
  0x7b   : > { %1808 = vmatpush1.bf16.msra.mxu1 %v4041_v7  ;;  %1696 = vmatprep.subr.bf16.mxu0 %v4042_v8  ;;  %v4050_v13 = vld [vmem:[#allocation4 + $0x284] ss:$16 sps:$4 sm:$0xff]   ;;  %v4053_v15 = vld [vmem:[#allocation4 + $0x280] ss:$16 sps:$4 sm:$0xff]   ;;  %v308_v7 = vld [vmem:[%s4750_s13 + $0x38] sm:$0xff] }
  0x7c   : > { %1809 = vmatprep.subr.bf16.mxu1 %v4044_v9  ;;  %v4054_v16 = vld [vmem:[#allocation4 + $0x64] ss:$16 sps:$4 sm:$0xff]   ;;  %v4058_v18 = vld [vmem:[#allocation4 + $0x60] ss:$16 sps:$4 sm:$0xff]   ;;  %v310_v9 = vld [vmem:[%s4750_s13 + $0x48] sm:$0xff] }
  0x7d   : > { %v4056_v17 = vld [vmem:[#allocation4 + $0x264] ss:$16 sps:$4 sm:$0xff]   ;;  %v4059_v19 = vld [vmem:[#allocation4 + $0x260] ss:$16 sps:$4 sm:$0xff]  }
  0x7e   : > { %1697 = vmatpush1.bf16.msra.mxu0 %v4046_v10  ;;  %v4060_v20 = vld [vmem:[#allocation4 + $0x44] ss:$16 sps:$4 sm:$0xff]   ;;  %v4064_v22 = vld [vmem:[#allocation4 + $0x40] ss:$16 sps:$4 sm:$0xff]  }
  0x7f   : > { %1810 = vmatpush1.bf16.msra.mxu1 %v4047_v11  ;;  %1698 = vmatprep.subr.bf16.mxu0 %v4048_v12  ;;  %v4062_v21 = vld [vmem:[#allocation4 + $0x244] ss:$16 sps:$4 sm:$0xff]   ;;  %v4065_v23 = vld [vmem:[#allocation4 + $0x240] ss:$16 sps:$4 sm:$0xff]  }
  0x80   : > { %1811 = vmatprep.subr.bf16.mxu1 %v4050_v13  ;;  %v4066_v24 = vld [vmem:[#allocation4 + $0x24] ss:$16 sps:$4 sm:$0xff]   ;;  %v4070_v26 = vld [vmem:[#allocation4 + $0x20] ss:$16 sps:$4 sm:$0xff]   ;;  %v316_v13 = vld [vmem:[%s4750_s13 + $0x78] sm:$0xff] }
  0x81   : > { %v4068_v25 = vld [vmem:[#allocation4 + $0x224] ss:$16 sps:$4 sm:$0xff]   ;;  %v4071_v27 = vld [vmem:[#allocation4 + $0x220] ss:$16 sps:$4 sm:$0xff]  }
  0x82   : > { %1699 = vmatpush1.bf16.msra.mxu0 %v4052_v14  ;;  %v4072_v28 = vld [vmem:[#allocation4 + $0x4] ss:$16 sps:$4 sm:$0xff]   ;;  %v4076_v30 = vld [vmem:[#allocation4] ss:$16 sps:$4 sm:$0xff]  }
  0x83   : > { %1812 = vmatpush1.bf16.msra.mxu1 %v4053_v15  ;;  %1700 = vmatprep.subr.bf16.mxu0 %v4054_v16  ;;  %v4074_v29 = vld [vmem:[#allocation4 + $0x204] ss:$16 sps:$4 sm:$0xff]   ;;  %v4077_v31 = vld [vmem:[#allocation4 + $0x200] ss:$16 sps:$4 sm:$0xff]  }
  0x84   : > { %1813 = vmatprep.subr.bf16.mxu1 %v4056_v17  ;;  %v4078_v32 = vld [vmem:[#allocation4 + $0x1e4] ss:$16 sps:$4 sm:$0xff]   ;;  %v4082_v34 = vld [vmem:[#allocation4 + $0x1e0] ss:$16 sps:$4 sm:$0xff]   ;;  %v318_v17 = vld [vmem:[%s4750_s13 + $0x88] sm:$0xff] }
  0x85   : > { %v4080_v33 = vld [vmem:[#allocation4 + $0x3e4] ss:$16 sps:$4 sm:$0xff]   ;;  %v4083_v35 = vld [vmem:[#allocation4 + $0x3e0] ss:$16 sps:$4 sm:$0xff]  }
  0x86   : > { %1701 = vmatpush1.bf16.msra.mxu0 %v4058_v18  ;;  %v4084_v36 = vld [vmem:[#allocation4 + $0x1c4] ss:$16 sps:$4 sm:$0xff]   ;;  %v4088_v38 = vld [vmem:[#allocation4 + $0x1c0] ss:$16 sps:$4 sm:$0xff]  }
  0x87   : > { %1814 = vmatpush1.bf16.msra.mxu1 %v4059_v19  ;;  %1702 = vmatprep.subr.bf16.mxu0 %v4060_v20  ;;  %v4086_v37 = vld [vmem:[#allocation4 + $0x3c4] ss:$16 sps:$4 sm:$0xff]   ;;  %v4089_v39 = vld [vmem:[#allocation4 + $0x3c0] ss:$16 sps:$4 sm:$0xff]  }
  0x88   : > { %1815 = vmatprep.subr.bf16.mxu1 %v4062_v21  ;;  %v4090_v40 = vld [vmem:[#allocation4 + $0x1a4] ss:$16 sps:$4 sm:$0xff]   ;;  %v4094_v42 = vld [vmem:[#allocation4 + $0x1a0] ss:$16 sps:$4 sm:$0xff]  }
  0x89   : > { %v4092_v41 = vld [vmem:[#allocation4 + $0x3a4] ss:$16 sps:$4 sm:$0xff]   ;;  %v4095_v43 = vld [vmem:[#allocation4 + $0x3a0] ss:$16 sps:$4 sm:$0xff]  }
  0x8a   : > { %1703 = vmatpush1.bf16.msra.mxu0 %v4064_v22  ;;  %v4096_v44 = vld [vmem:[#allocation4 + $0x184] ss:$16 sps:$4 sm:$0xff]   ;;  %v4100_v50 = vld [vmem:[#allocation4 + $0x180] ss:$16 sps:$4 sm:$0xff]  }
  0x8b   : > { %1816 = vmatpush1.bf16.msra.mxu1 %v4065_v23  ;;  %1704 = vmatprep.subr.bf16.mxu0 %v4066_v24  ;;  %v4098_v45 = vld [vmem:[#allocation4 + $0x384] ss:$16 sps:$4 sm:$0xff]   ;;  %v4101_v51 = vld [vmem:[#allocation4 + $0x380] ss:$16 sps:$4 sm:$0xff]  }
  0x8c   : > { %1817 = vmatprep.subr.bf16.mxu1 %v4068_v25  ;;  %v309_v47 = vld [vmem:[%s4750_s13 + $0x40] sm:$0xff]  ;;  %v311_v49 = vld [vmem:[%s4750_s13 + $0x50] sm:$0xff]  ;;  %v322_v25 = vld [vmem:[%s4750_s13 + $0xa8] sm:$0xff] }
  0x8d   : > { %v4102_v52 = vld [vmem:[#allocation4 + $0x164] ss:$16 sps:$4 sm:$0xff]   ;;  %v4768_v53 = vpack.c.bf16 %v309_v47, %v302_v46  ;;  %v4770_v54 = vpack.c.bf16 %v311_v49, %v304_v48  ;;  %v4106_v56 = vld [vmem:[#allocation4 + $0x160] ss:$16 sps:$4 sm:$0xff]   ;;  %v346_v47 = vld [vmem:[%s4750_s13 + $0x168] sm:$0xff] }
  0x8e   : > { %1705 = vmatpush1.bf16.msra.mxu0 %v4070_v26  ;;  %v4104_v55 = vld [vmem:[#allocation4 + $0x364] ss:$16 sps:$4 sm:$0xff]   ;;  %v4107_v57 = vld [vmem:[#allocation4 + $0x360] ss:$16 sps:$4 sm:$0xff]  }
  0x8f   : > { %1818 = vmatpush1.bf16.msra.mxu1 %v4071_v27  ;;  %1706 = vmatprep.subr.bf16.mxu0 %v4072_v28  ;;  %v4108_v58 = vld [vmem:[#allocation4 + $0x144] ss:$16 sps:$4 sm:$0xff]   ;;  %v4112_v60 = vld [vmem:[#allocation4 + $0x140] ss:$16 sps:$4 sm:$0xff]   ;;  %v324_v27 = vld [vmem:[%s4750_s13 + $0xb8] sm:$0xff] }
  0x90   : > { %1819 = vmatprep.subr.bf16.mxu1 %v4074_v29  ;;  %1724 = vmatprep.mubr.bf16.mxu0 %v4768_v53  ;;  %v4110_v59 = vld [vmem:[#allocation4 + $0x344] ss:$16 sps:$4 sm:$0xff]   ;;  %v4113_v61 = vld [vmem:[#allocation4 + $0x340] ss:$16 sps:$4 sm:$0xff]   ;;  %v330_v29 = vld [vmem:[%s4750_s13 + $0xe8] sm:$0xff] }
  0x91   : > { %1837 = vmatprep.mubr.bf16.mxu1 %v4770_v54  ;;  %v4114_v62 = vld [vmem:[#allocation4 + $0x124] ss:$16 sps:$4 sm:$0xff]   ;;  %v4118_v0 = vld [vmem:[#allocation4 + $0x120] ss:$16 sps:$4 sm:$0xff]  }
  0x92   : > { %1707 = vmatpush1.bf16.msra.mxu0 %v4076_v30  ;;  %v4116_v63 = vld [vmem:[#allocation4 + $0x324] ss:$16 sps:$4 sm:$0xff]   ;;  %v4119_v1 = vld [vmem:[#allocation4 + $0x320] ss:$16 sps:$4 sm:$0xff]  }
  0x93   : > { %1820 = vmatpush1.bf16.msra.mxu1 %v4077_v31  ;;  %1708 = vmatprep.subr.bf16.mxu0 %v4078_v32  ;;  %v4120_v2 = vld [vmem:[#allocation4 + $0x104] ss:$16 sps:$4 sm:$0xff]   ;;  %v4124_v4 = vld [vmem:[#allocation4 + $0x100] ss:$16 sps:$4 sm:$0xff]   ;;  %v332_v31 = vld [vmem:[%s4750_s13 + $0xf8] sm:$0xff] }
  0x94   : > { %1821 = vmatprep.subr.bf16.mxu1 %v4080_v33  ;;  %v4122_v3 = vld [vmem:[#allocation4 + $0x304] ss:$16 sps:$4 sm:$0xff]   ;;  %v4125_v5 = vld [vmem:[#allocation4 + $0x300] ss:$16 sps:$4 sm:$0xff]  }
  0x95   : > { %v301_v6 = vld [vmem:[%s4750_s13] sm:$0xff]  ;;  %v303_v8 = vld [vmem:[%s4750_s13 + $0x10] sm:$0xff] }
  0x96   : > { %1709 = vmatpush2.bf16.msra.mxu0 %v4082_v34  ;;  %v4128_v10 = vld [vmem:[#allocation4 + $0x4e4] ss:$16 sps:$4 sm:$0xff]   ;;  %v4126_v12 = vld [vmem:[#allocation4 + $0x4e0] ss:$16 sps:$4 sm:$0xff]   ;;  %v4780_v15 = vpack.c.bf16 %v308_v7, %v301_v6  ;;  %v4782_v16 = vpack.c.bf16 %v310_v9, %v303_v8 }
  0x97   : > { %1822 = vmatpush2.bf16.msra.mxu1 %v4083_v35  ;;  %1710 = vmatprep.subr.bf16.mxu0 %v4084_v36  ;;  %v4131_v11 = vld [vmem:[#allocation4 + $0x604] ss:$16 sps:$4 sm:$0xff]   ;;  %v4129_v19 = vld [vmem:[#allocation4 + $0x600] ss:$16 sps:$4 sm:$0xff]  }
  0x98   : > { %1823 = vmatprep.subr.bf16.mxu1 %v4086_v37  ;;  %v323_v14 = vld [vmem:[%s4750_s13 + $0xb0] sm:$0xff]  ;;  %v325_v18 = vld [vmem:[%s4750_s13 + $0xc0] sm:$0xff] }
  0x99   : > { %v4134_v20 = vld [vmem:[#allocation4 + $0x4c4] ss:$16 sps:$4 sm:$0xff]   ;;  %v4786_v21 = vpack.c.bf16 %v323_v14, %v316_v13  ;;  %v4132_v22 = vld [vmem:[#allocation4 + $0x4c0] ss:$16 sps:$4 sm:$0xff]   ;;  %v4788_v23 = vpack.c.bf16 %v325_v18, %v318_v17  ;;  %v4182_v13 = vld [vmem:[#allocation4 + $0x2ec] ss:$16 sps:$4 sm:$0xff]  }
  0x9a   : > { %1711 = vmatpush2.bf16.msra.mxu0 %v4088_v38  ;;  %v315_v24 = vld [vmem:[%s4750_s13 + $0x70] sm:$0xff]  ;;  %v317_v26 = vld [vmem:[%s4750_s13 + $0x80] sm:$0xff]  ;;  %v366_v14 = vld [vmem:[%s4750_s13 + $0x208] sm:$0xff] }
  0x9b   : > { %1824 = vmatpush2.bf16.msra.mxu1 %v4089_v39  ;;  %1712 = vmatprep.subr.bf16.mxu0 %v4090_v40  ;;  %v4137_v28 = vld [vmem:[#allocation4 + $0x4a4] ss:$16 sps:$4 sm:$0xff]   ;;  %v4802_v33 = vpack.c.bf16 %v322_v25, %v315_v24  ;;  %v4804_v34 = vpack.c.bf16 %v324_v27, %v317_v26  ;;  %v4135_v35 = vld [vmem:[#allocation4 + $0x4a0] ss:$16 sps:$4 sm:$0xff]   ;;  %v372_v18 = vld [vmem:[%s4750_s13 + $0x238] sm:$0xff] }
  0x9c   : > { %1825 = vmatprep.subr.bf16.mxu1 %v4092_v41  ;;  %v337_v30 = vld [vmem:[%s4750_s13 + $0x120] sm:$0xff]  ;;  %v339_v32 = vld [vmem:[%s4750_s13 + $0x130] sm:$0xff]  ;;  %v336_v41 = vld [vmem:[%s4750_s13 + $0x118] sm:$0xff] }
  0x9d   : > { %v4806_v36 = vpack.c.bf16 %v337_v30, %v330_v29  ;;  %v4140_v37 = vld [vmem:[#allocation4 + $0x484] ss:$16 sps:$4 sm:$0xff]   ;;  %v4808_v38 = vpack.c.bf16 %v339_v32, %v332_v31  ;;  %v4138_v39 = vld [vmem:[#allocation4 + $0x480] ss:$16 sps:$4 sm:$0xff]   ;;  %v378_v32 = vld [vmem:[%s4750_s13 + $0x268] sm:$0xff] }
  0x9e   : > { %1713 = vmatpush2.bf16.msra.mxu0 %v4094_v42  ;;  %v329_v40 = vld [vmem:[%s4750_s13 + $0xe0] sm:$0xff]  ;;  %v331_v42 = vld [vmem:[%s4750_s13 + $0xf0] sm:$0xff] }
  0x9f   : > { %1826 = vmatpush2.bf16.msra.mxu1 %v4095_v43  ;;  %1714 = vmatprep.subr.bf16.mxu0 %v4096_v44  ;;  %v338_v43 = vld [vmem:[%s4750_s13 + $0x128] sm:$0xff]  ;;  %v4143_v44 = vld [vmem:[#allocation4 + $0x464] ss:$16 sps:$4 sm:$0xff]   ;;  %v4822_v49 = vpack.c.bf16 %v336_v41, %v329_v40  ;;  %v4150_v9 = vld [vmem:[#allocation4 + $0x400] ss:$16 sps:$4 sm:$0xff]  }
  0xa0   : > { %1827 = vmatprep.subr.bf16.mxu1 %v4098_v45  ;;  %v344_v45 = vld [vmem:[%s4750_s13 + $0x158] sm:$0xff]  ;;  %v351_v46 = vld [vmem:[%s4750_s13 + $0x190] sm:$0xff]  ;;  %v353_v48 = vld [vmem:[%s4750_s13 + $0x1a0] sm:$0xff] }
  0xa1   : > { %v4152_v7 = vld [vmem:[#allocation4 + $0x404] ss:$16 sps:$4 sm:$0xff]   ;;  %v4153_v26 = vld [vmem:[#allocation4 + $0x5e0] ss:$16 sps:$4 sm:$0xff]   ;;  %v386_v40 = vld [vmem:[%s4750_s13 + $0x2a8] sm:$0xff] }
  0xa2   : > { %1715 = vmatpush2.bf16.msra.mxu0 %v4100_v50  ;;  %v4824_v50 = vpack.c.bf16 %v338_v43, %v331_v42  ;;  %v4155_v17 = vld [vmem:[#allocation4 + $0x5e4] ss:$16 sps:$4 sm:$0xff]   ;;  %v4156_v30 = vld [vmem:[#allocation4 + $0x5c0] ss:$16 sps:$4 sm:$0xff]   ;;  %v388_v42 = vld [vmem:[%s4750_s13 + $0x2b8] sm:$0xff] }
  0xa3   : > { %1828 = vmatpush2.bf16.msra.mxu1 %v4101_v51  ;;  %1716 = vmatprep.subr.bf16.mxu0 %v4102_v52  ;;  %v4141_v51 = vld [vmem:[#allocation4 + $0x460] ss:$16 sps:$4 sm:$0xff]   ;;  %v4826_v52 = vpack.c.bf16 %v351_v46, %v344_v45 }
  0xa4   : > { %1829 = vmatprep.subr.bf16.mxu1 %v4104_v55  ;;  %v4146_v55 = vld [vmem:[#allocation4 + $0x444] ss:$16 sps:$4 sm:$0xff]   ;;  %v4159_v46 = vld [vmem:[#allocation4 + $0x5a0] ss:$16 sps:$4 sm:$0xff]  }
  0xa5   : > { %v371_v31 = vld [vmem:[%s4750_s13 + $0x230] sm:$0xff]  ;;  %v393_v41 = vld [vmem:[%s4750_s13 + $0x2e0] sm:$0xff] }
  0xa6   : > { %1717 = vmatpush2.bf16.msra.mxu0 %v4106_v56  ;;  %v4828_v56 = vpack.c.bf16 %v353_v48, %v346_v47  ;;  %v395_v43 = vld [vmem:[%s4750_s13 + $0x2f0] sm:$0xff]  ;;  %v4886_v47 = vpack.c.bf16 %v393_v41, %v386_v40  ;;  %v314_v41 = vld [vmem:[%s4750_s13 + $0x68] sm:$0xff] }
  0xa7   : > { %1830 = vmatpush2.bf16.msra.mxu1 %v4107_v57  ;;  %1718 = vmatprep.subr.bf16.mxu0 %v4108_v58  ;;  %v4144_v57 = vld [vmem:[#allocation4 + $0x440] ss:$16 sps:$4 sm:$0xff]   ;;  %v4164_v48 = vld [vmem:[#allocation4 + $0x584] ss:$16 sps:$4 sm:$0xff]  }
  0xa8   : > { %1831 = vmatprep.subr.bf16.mxu1 %v4110_v59  ;;  %v343_v58 = vld [vmem:[%s4750_s13 + $0x150] sm:$0xff]  ;;  %v350_v59 = vld [vmem:[%s4750_s13 + $0x188] sm:$0xff] }
  0xa9   : > { %v307_v40 = vld [vmem:[%s4750_s13 + $0x30] sm:$0xff] }
  0xaa   : > { %1719 = vmatpush2.bf16.msra.mxu0 %v4112_v60  ;;  %v345_v60 = vld [vmem:[%s4750_s13 + $0x160] sm:$0xff] }
  0xab   : > { %1832 = vmatpush2.bf16.msra.mxu1 %v4113_v61  ;;  %1720 = vmatprep.subr.bf16.mxu0 %v4114_v62  ;;  %v352_v61 = vld [vmem:[%s4750_s13 + $0x198] sm:$0xff]  ;;  %v4149_v62 = vld [vmem:[#allocation4 + $0x424] ss:$16 sps:$4 sm:$0xff]  }
  0xac   : > { %1833 = vmatprep.subr.bf16.mxu1 %v4116_v63  ;;  %v358_v63 = vld [vmem:[%s4750_s13 + $0x1c8] sm:$0xff] }
  0xae   : > { %1721 = vmatpush2.bf16.msra.mxu0 %v4118_v0  ;;  %v365_v0 = vld [vmem:[%s4750_s13 + $0x200] sm:$0xff] }
  0xaf   : > { %1834 = vmatpush2.bf16.msra.mxu1 %v4119_v1  ;;  %1722 = vmatprep.subr.bf16.mxu0 %v4120_v2  ;;  %v360_v1 = vld [vmem:[%s4750_s13 + $0x1d8] sm:$0xff]  ;;  %v367_v2 = vld [vmem:[%s4750_s13 + $0x210] sm:$0xff]  ;;  %v4846_v6 = vpack.c.bf16 %v365_v0, %v358_v63  ;;  %v402_v0 = vld [vmem:[%s4750_s13 + $0x328] sm:$0xff] }
  0xb0   : > { %1835 = vmatprep.subr.bf16.mxu1 %v4122_v3  ;;  %v4842_v3 = vpack.c.bf16 %v350_v59, %v343_v58  ;;  %v4848_v8 = vpack.c.bf16 %v367_v2, %v360_v1  ;;  %v392_v58 = vld [vmem:[%s4750_s13 + $0x2d8] sm:$0xff]  ;;  %v387_v59 = vld [vmem:[%s4750_s13 + $0x2b0] sm:$0xff]  ;;  %v409_v1 = vld [vmem:[%s4750_s13 + $0x360] sm:$0xff] }
  0xb1   : > { %v407_v63 = vld [vmem:[%s4750_s13 + $0x350] sm:$0xff] }
  0xb2   : > { %1723 = vmatpush2.bf16.msra.mxu0 %v4124_v4  ;;  %v4844_v4 = vpack.c.bf16 %v352_v61, %v345_v60  ;;  %v394_v60 = vld [vmem:[%s4750_s13 + $0x2e8] sm:$0xff]  ;;  %v4167_v61 = vld [vmem:[#allocation4 + $0x564] ss:$16 sps:$4 sm:$0xff]  }
  0xb3   : > { %1836 = vmatpush2.bf16.msra.mxu1 %v4125_v5  ;;  %1918 = vmatprep.subr.bf16.mxu0 %v4128_v10  ;;  %v4147_v5 = vld [vmem:[#allocation4 + $0x420] ss:$16 sps:$4 sm:$0xff]  }
  0xb4   : > { %2045 = vmatprep.subr.bf16.mxu1 %v4131_v11  ;;  %v357_v10 = vld [vmem:[%s4750_s13 + $0x1c0] sm:$0xff]  ;;  %v364_v11 = vld [vmem:[%s4750_s13 + $0x1f8] sm:$0xff] }
  0xb5   : > { %1725 = vmatmul.mubr.bf16.vlgmr.msra.gmra.mxu0 %v4780_v15  ;;  %v4862_v24 = vpack.c.bf16 %v364_v11, %v357_v10  ;;  %v4170_v10 = vld [vmem:[#allocation4 + $0x544] ss:$16 sps:$4 sm:$0xff]   ;;  %v4908_v11 = vpack.c.bf16 %v409_v1, %v402_v0  ;;  %v4186_v0 = vld [vmem:[#allocation4 + $0x2c8] ss:$16 sps:$4 sm:$0xff]  }
  0xb6   : > { %1838 = vmatmul.mubr.bf16.vlgmr.msra.gmra.mxu1 %v4782_v16  ;;  %1919 = vmatpush1.bf16.msra.mxu0 %v4126_v12  ;;  %v359_v12 = vld [vmem:[%s4750_s13 + $0x1d0] sm:$0xff] }
  0xb7   : > { %2046 = vmatpush1.bf16.msra.mxu1 %v4129_v19  ;;  %1920 = vmatprep.subr.bf16.mxu0 %v4134_v20  ;;  %v379_v19 = vld [vmem:[%s4750_s13 + $0x270] sm:$0xff]  ;;  %v374_v20 = vld [vmem:[%s4750_s13 + $0x248] sm:$0xff]  ;;  %v4864_v25 = vpack.c.bf16 %v366_v14, %v359_v12 }
  0xb8   : > { %1734 = vmatprep.mubr.bf16.mxu0 %v4786_v21  ;;  %1847 = vmatprep.mubr.bf16.mxu1 %v4788_v23  ;;  %v4866_v27 = vpack.c.bf16 %v379_v19, %v372_v18  ;;  %v4168_v12 = vld [vmem:[#allocation4 + $0x540] ss:$16 sps:$4 sm:$0xff]   ;;  %v406_v14 = vld [vmem:[%s4750_s13 + $0x348] sm:$0xff]  ;;  %v408_v18 = vld [vmem:[%s4750_s13 + $0x358] sm:$0xff] }
  0xb9   : > { %2257 = vmatprep.subr.bf16.mxu1 %v4182_v13  ;;  %v399_v13 = vld [vmem:[%s4750_s13 + $0x310] sm:$0xff] }
  0xba   : > { %1921 = vmatpush1.bf16.msra.mxu0 %v4132_v22  ;;  %v381_v22 = vld [vmem:[%s4750_s13 + $0x280] sm:$0xff]  ;;  %v319_v1 = vld [vmem:[%s4750_s13 + $0x90] sm:$0xff] }
  0xbb   : > { %1922 = vmatprep.subr.bf16.mxu0 %v4137_v28  ;;  %v4158_v28 = vld [vmem:[#allocation4 + $0x5c4] ss:$16 sps:$4 sm:$0xff]   ;;  %v4868_v29 = vpack.c.bf16 %v381_v22, %v374_v20  ;;  %v306_v20 = vld [vmem:[%s4750_s13 + $0x28] sm:$0xff] }
  0xbc   : > { %v4173_v19 = vld [vmem:[#allocation4 + $0x524] ss:$16 sps:$4 sm:$0xff]  }
  0xbd   : > { %1735 = vmatmul.mubr.bf16.gmra.mxu0 %v4802_v33  ;;  %v313_v22 = vld [vmem:[%s4750_s13 + $0x60] sm:$0xff] }
  0xbe   : > { %1848 = vmatmul.mubr.bf16.gmra.mxu1 %v4804_v34  ;;  %1923 = vmatpush1.bf16.msra.mxu0 %v4135_v35  ;;  %v373_v35 = vld [vmem:[%s4750_s13 + $0x240] sm:$0xff] }
  0xbf   : > { %1744 = vmatprep.mubr.bf16.mxu0 %v4806_v36  ;;  %1924 = vmatprep.subr.bf16.mxu0 %v4140_v37  ;;  %v380_v37 = vld [vmem:[%s4750_s13 + $0x278] sm:$0xff] }
  0xc0   : > { %1857 = vmatprep.mubr.bf16.mxu1 %v4808_v38  ;;  %v4884_v45 = vpack.c.bf16 %v380_v37, %v373_v35  ;;  %v4174_v35 = vld [vmem:[#allocation4 + $0x500] ss:$16 sps:$4 sm:$0xff]  }
  0xc1   : > { %v305_v37 = vld [vmem:[%s4750_s13 + $0x20] sm:$0xff] }
  0xc2   : > { %1925 = vmatpush1.bf16.msra.mxu0 %v4138_v39  ;;  %v4161_v39 = vld [vmem:[#allocation4 + $0x5a4] ss:$16 sps:$4 sm:$0xff]  }
  0xc3   : > { %1926 = vmatprep.subr.bf16.mxu0 %v4143_v44  ;;  %v4882_v44 = vpack.c.bf16 %v378_v32, %v371_v31  ;;  %v4924_v31 = vpack.c.bf16 %v313_v22, %v306_v20  ;;  %v4176_v32 = vld [vmem:[#allocation4 + $0x504] ss:$16 sps:$4 sm:$0xff]   ;;  %v4189_v22 = vld [vmem:[#allocation4 + $0xa8] ss:$16 sps:$4 sm:$0xff]  }
  0xc4   : > { %v341_v20 = vld [vmem:[%s4750_s13 + $0x140] sm:$0xff] }
  0xc5   : > { %1745 = vmatmul.mubr.bf16.gmra.mxu0 %v4822_v49 }
  0xc6   : > { %1858 = vmatmul.mubr.bf16.gmra.mxu1 %v4824_v50  ;;  %1927 = vmatpush1.bf16.msra.mxu0 %v4141_v51  ;;  %v4888_v51 = vpack.c.bf16 %v395_v43, %v388_v42  ;;  %v5659_v42 = vmov 0   ;;  %v4179_v43 = vld [vmem:[#allocation4 + $0xec] ss:$16 sps:$4 sm:$0xff]  }
  0xc7   : > { %1754 = vmatprep.mubr.bf16.mxu0 %v4826_v52  ;;  %1928 = vmatprep.subr.bf16.mxu0 %v4146_v55  ;;  %v4162_v55 = vld [vmem:[#allocation4 + $0x580] ss:$16 sps:$4 sm:$0xff]  }
  0xc8   : > { %1867 = vmatprep.mubr.bf16.mxu1 %v4828_v56 }
  0xca   : > { %1929 = vmatpush1.bf16.msra.mxu0 %v4144_v57  ;;  %v385_v57 = vld [vmem:[%s4750_s13 + $0x2a0] sm:$0xff] }
  0xcb   : > { %1930 = vmatprep.subr.bf16.mxu0 %v4149_v62  ;;  %v400_v62 = vld [vmem:[%s4750_s13 + $0x318] sm:$0xff]  ;;  %v4902_v2 = vpack.c.bf16 %v392_v58, %v385_v57  ;;  %v4936_v57 = vpack.c.bf16 %v314_v41, %v307_v40  ;;  %v333_v41 = vld [vmem:[%s4750_s13 + $0x100] sm:$0xff] }
  0xcc   : > { %v320_v58 = vld [vmem:[%s4750_s13 + $0x98] sm:$0xff] }
  0xcd   : > { %1755 = vmatmul.mubr.bf16.gmra.mxu0 %v4842_v3 }
  0xce   : > { %1868 = vmatmul.mubr.bf16.gmra.mxu1 %v4844_v4  ;;  %1931 = vmatpush1.bf16.msra.mxu0 %v4147_v5  ;;  %v4904_v5 = vpack.c.bf16 %v394_v60, %v387_v59  ;;  %v327_v59 = vld [vmem:[%s4750_s13 + $0xd0] sm:$0xff]  ;;  %v4185_v60 = vld [vmem:[#allocation4 + $0xcc] ss:$16 sps:$4 sm:$0xff]  }
  0xcf   : > { %1764 = vmatprep.mubr.bf16.mxu0 %v4846_v6  ;;  %1932 = vmatprep.subr.bf16.mxu0 %v4152_v7  ;;  %v4165_v7 = vld [vmem:[#allocation4 + $0x560] ss:$16 sps:$4 sm:$0xff]  }
  0xd0   : > { %1877 = vmatprep.mubr.bf16.mxu1 %v4848_v8 }
  0xd2   : > { %1933 = vmatpush1.bf16.msra.mxu0 %v4150_v9  ;;  %v4906_v9 = vpack.c.bf16 %v407_v63, %v400_v62  ;;  %v4183_v62 = vld [vmem:[#allocation4 + $0xc8] ss:$16 sps:$4 sm:$0xff]   ;;  %v4940_v63 = vpack.c.bf16 %v327_v59, %v320_v58  ;;  %v4203_v58 = vld [vmem:[#allocation4 + $0x6c] ss:$16 sps:$4 sm:$0xff]  }
  0xd3   : > { %1934 = vmatprep.subr.bf16.mxu0 %v4155_v17  ;;  %v401_v17 = vld [vmem:[%s4750_s13 + $0x320] sm:$0xff]  ;;  %v4206_v59 = vld [vmem:[#allocation4 + $0x26c] ss:$16 sps:$4 sm:$0xff]  }
  0xd5   : > { %1765 = vmatmul.mubr.bf16.gmra.mxu0 %v4862_v24 }
  0xd6   : > { %1878 = vmatmul.mubr.bf16.gmra.mxu1 %v4864_v25  ;;  %1935 = vmatpush2.bf16.msra.mxu0 %v4153_v26  ;;  %v4920_v26 = vpack.c.bf16 %v406_v14, %v399_v13  ;;  %v4191_v13 = vld [vmem:[#allocation4 + $0xac] ss:$16 sps:$4 sm:$0xff]  }
  0xd7   : > { %1774 = vmatprep.mubr.bf16.mxu0 %v4866_v27  ;;  %1936 = vmatprep.subr.bf16.mxu0 %v4158_v28  ;;  %v4922_v28 = vpack.c.bf16 %v408_v18, %v401_v17  ;;  %v4194_v14 = vld [vmem:[#allocation4 + $0x2ac] ss:$16 sps:$4 sm:$0xff]  }
  0xd8   : > { %1887 = vmatprep.mubr.bf16.mxu1 %v4868_v29  ;;  %v334_v17 = vld [vmem:[%s4750_s13 + $0x108] sm:$0xff] }
  0xd9   : > { %v4957_v40 = vpack.c.bf16 %v341_v20, %v334_v17  ;;  %v347_v20 = vld [vmem:[%s4750_s13 + $0x170] sm:$0xff] }
  0xda   : > { %1937 = vmatpush2.bf16.msra.mxu0 %v4156_v30  ;;  %v4171_v30 = vld [vmem:[#allocation4 + $0x520] ss:$16 sps:$4 sm:$0xff]  }
  0xdb   : > { %1938 = vmatprep.subr.bf16.mxu0 %v4161_v39  ;;  %v312_v39 = vld [vmem:[%s4750_s13 + $0x58] sm:$0xff] }
  0xdd   : > { %1775 = vmatmul.mubr.bf16.gmra.mxu0 %v4882_v44 }
  0xde   : > { %1888 = vmatmul.mubr.bf16.gmra.mxu1 %v4884_v45  ;;  %1939 = vmatpush2.bf16.msra.mxu0 %v4159_v46  ;;  %v4177_v46 = vld [vmem:[#allocation4 + $0xe8] ss:$16 sps:$4 sm:$0xff]  }
  0xdf   : > { %1784 = vmatprep.mubr.bf16.mxu0 %v4886_v47  ;;  %1940 = vmatprep.subr.bf16.mxu0 %v4164_v48  ;;  %v4180_v48 = vld [vmem:[#allocation4 + $0x2e8] ss:$16 sps:$4 sm:$0xff]  }
  0xe0   : > { %1897 = vmatprep.mubr.bf16.mxu1 %v4888_v51 }
  0xe2   : > { %1941 = vmatpush2.bf16.msra.mxu0 %v4162_v55  ;;  %v4934_v55 = vpack.c.bf16 %v312_v39, %v305_v37  ;;  %v4195_v37 = vld [vmem:[#allocation4 + $0x88] ss:$16 sps:$4 sm:$0xff]  }
  0xe3   : > { %1942 = vmatprep.subr.bf16.mxu0 %v4167_v61  ;;  %v4188_v61 = vld [vmem:[#allocation4 + $0x2cc] ss:$16 sps:$4 sm:$0xff]   ;;  %v4198_v39 = vld [vmem:[#allocation4 + $0x288] ss:$16 sps:$4 sm:$0xff]  }
  0xe5   : > { %1785 = vmatmul.mubr.bf16.gmra.mxu0 %v4902_v2 }
  0xe6   : > { %1898 = vmatmul.mubr.bf16.gmra.mxu1 %v4904_v5  ;;  %1943 = vmatpush2.bf16.msra.mxu0 %v4165_v7  ;;  %v326_v7 = vld [vmem:[%s4750_s13 + $0xc8] sm:$0xff] }
  0xe7   : > { %1794 = vmatprep.mubr.bf16.mxu0 %v4906_v9  ;;  %1944 = vmatprep.subr.bf16.mxu0 %v4170_v10  ;;  %v321_v10 = vld [vmem:[%s4750_s13 + $0xa0] sm:$0xff]  ;;  %v4952_v18 = vpack.c.bf16 %v326_v7, %v319_v1  ;;  %v348_v1 = vld [vmem:[%s4750_s13 + $0x178] sm:$0xff]  ;;  %v355_v7 = vld [vmem:[%s4750_s13 + $0x1b0] sm:$0xff] }
  0xe8   : > { %1907 = vmatprep.mubr.bf16.mxu1 %v4908_v11  ;;  %v4974_v17 = vpack.c.bf16 %v355_v7, %v348_v1  ;;  %v4222_v1 = vld [vmem:[#allocation4 + $0x208] ss:$16 sps:$4 sm:$0xff]  }
  0xea   : > { %1945 = vmatpush2.bf16.msra.mxu0 %v4168_v12  ;;  %v328_v12 = vld [vmem:[%s4750_s13 + $0xd8] sm:$0xff]  ;;  %5688 = vst [vmem:[#allocation14_spill] sm:$0xff] %v4974_v17 }
  0xeb   : > { %1946 = vmatprep.subr.bf16.mxu0 %v4173_v19  ;;  %v4954_v19 = vpack.c.bf16 %v328_v12, %v321_v10  ;;  %v4209_v10 = vld [vmem:[#allocation4 + $0x4c] ss:$16 sps:$4 sm:$0xff]  }
  0xec   : > { %v4212_v12 = vld [vmem:[#allocation4 + $0x24c] ss:$16 sps:$4 sm:$0xff]  }
  0xed   : > { %1795 = vmatmul.mubr.bf16.gmra.mxu0 %v4920_v26 }
  0xee   : > { %1908 = vmatmul.mubr.bf16.gmra.mxu1 %v4922_v28  ;;  %1947 = vmatpush2.bf16.msra.mxu0 %v4171_v30  ;;  %v4192_v30 = vld [vmem:[#allocation4 + $0x2a8] ss:$16 sps:$4 sm:$0xff]  }
  0xef   : > { %1950 = vmatprep.mubr.bf16.mxu0 %v4924_v31  ;;  %1948 = vmatprep.subr.bf16.mxu0 %v4176_v32  ;;  %v4197_v32 = vld [vmem:[#allocation4 + $0x8c] ss:$16 sps:$4 sm:$0xff]  }
  0xf0   : > { %2063 = vmatprep.mubr.bf16.mxu1 %v5659_v42 }
  0xf2   : > { %1949 = vmatpush2.bf16.msra.mxu0 %v4174_v35  ;;  %v4200_v35 = vld [vmem:[#allocation4 + $0x28c] ss:$16 sps:$4 sm:$0xff]  }
  0xf3   : > { %2144 = vmatprep.subr.bf16.mxu0 %v4179_v43  ;;  %v340_v43 = vld [vmem:[%s4750_s13 + $0x138] sm:$0xff] }
  0xf5   : > { %1951 = vmatmul.mubr.bf16.vlgmr.msra.gmra.mxu0 %v4934_v55 }
  0xf6   : > { %3695 = vmatmul.mubr.msk.bf16.vlgmr.msra.gmra.mxu1 %vm1667_vm0, %v4936_v57  ;;  %2145 = vmatpush1.bf16.msra.mxu0 %v4177_v46  ;;  %v335_v46 = vld [vmem:[%s4750_s13 + $0x110] sm:$0xff] }
  0xf7   : > { %2258 = vmatpush1.bf16.msra.mxu1 %v4180_v48  ;;  %2146 = vmatprep.subr.bf16.mxu0 %v4185_v60  ;;  %v342_v48 = vld [vmem:[%s4750_s13 + $0x148] sm:$0xff] }
  0xf8   : > { %2259 = vmatprep.subr.bf16.mxu1 %v4188_v61  ;;  %1960 = vmatprep.mubr.bf16.mxu0 %v4940_v63  ;;  %v4201_v60 = vld [vmem:[#allocation4 + $0x68] ss:$16 sps:$4 sm:$0xff]  }
  0xf9   : > { %2073 = vmatprep.mubr.bf16.mxu1 %v5659_v42  ;;  %v4204_v61 = vld [vmem:[#allocation4 + $0x268] ss:$16 sps:$4 sm:$0xff]  }
  0xfa   : > { %2147 = vmatpush1.bf16.msra.mxu0 %v4183_v62  ;;  %v4968_v62 = vpack.c.bf16 %v340_v43, %v333_v41  ;;  %v4216_v41 = vld [vmem:[#allocation4 + $0x228] ss:$16 sps:$4 sm:$0xff]  }
  0xfb   : > { %2260 = vmatpush1.bf16.msra.mxu1 %v4186_v0  ;;  %2148 = vmatprep.subr.bf16.mxu0 %v4191_v13  ;;  %v4970_v0 = vpack.c.bf16 %v342_v48, %v335_v46  ;;  %v4207_v13 = vld [vmem:[#allocation4 + $0x48] ss:$16 sps:$4 sm:$0xff]  }
  0xfc   : > { %2261 = vmatprep.subr.bf16.mxu1 %v4194_v14  ;;  %v4210_v14 = vld [vmem:[#allocation4 + $0x248] ss:$16 sps:$4 sm:$0xff]  }
  0xfd   : > { %1961 = vmatmul.mubr.bf16.gmra.mxu0 %v4952_v18  ;;  %5687 = vst [vmem:[#allocation13_spill] sm:$0xff] %v4970_v0  ;;  %v362_v48 = vld [vmem:[%s4750_s13 + $0x1e8] sm:$0xff] }
  0xfe   : > { %3696 = vmatmul.mubr.msk.bf16.gmra.mxu1 %vm1667_vm0, %v4954_v19  ;;  %2149 = vmatpush1.bf16.msra.mxu0 %v4189_v22  ;;  %v354_v22 = vld [vmem:[%s4750_s13 + $0x1a8] sm:$0xff] }
  0xff   : > { %2262 = vmatpush1.bf16.msra.mxu1 %v4192_v30  ;;  %2150 = vmatprep.subr.bf16.mxu0 %v4197_v32  ;;  %v349_v30 = vld [vmem:[%s4750_s13 + $0x180] sm:$0xff]  ;;  %v356_v32 = vld [vmem:[%s4750_s13 + $0x1b8] sm:$0xff]  ;;  %v4985_v43 = vpack.c.bf16 %v354_v22, %v347_v20  ;;  %v363_v20 = vld [vmem:[%s4750_s13 + $0x1f0] sm:$0xff] }
 0x100   : > { %2263 = vmatprep.subr.bf16.mxu1 %v4200_v35  ;;  %1970 = vmatprep.mubr.bf16.mxu0 %v4957_v40  ;;  %v4215_v35 = vld [vmem:[#allocation4 + $0x2c] ss:$16 sps:$4 sm:$0xff]   ;;  %v4987_v46 = vpack.c.bf16 %v356_v32, %v349_v30  ;;  %v4225_v30 = vld [vmem:[#allocation4 + $0x1e8] ss:$16 sps:$4 sm:$0xff]  }
 0x101   : > { %2083 = vmatprep.mubr.bf16.mxu1 %v5659_v42  ;;  %5689 = vst [vmem:[#allocation15_spill] sm:$0xff] %v4985_v43  ;;  %v4230_v22 = vld [vmem:[#allocation4 + $0x3ec] ss:$16 sps:$4 sm:$0xff]   ;;  %v4228_v32 = vld [vmem:[#allocation4 + $0x3e8] ss:$16 sps:$4 sm:$0xff]  }
 0x102   : > { %2151 = vmatpush1.bf16.msra.mxu0 %v4195_v37  ;;  %v4218_v37 = vld [vmem:[#allocation4 + $0x22c] ss:$16 sps:$4 sm:$0xff]   ;;  %5690 = vst [vmem:[#allocation16_spill] sm:$0xff] %v4987_v46 }
 0x103   : > { %2264 = vmatpush1.bf16.msra.mxu1 %v4198_v39  ;;  %2152 = vmatprep.subr.bf16.mxu0 %v4203_v58  ;;  %v4213_v39 = vld [vmem:[#allocation4 + $0x28] ss:$16 sps:$4 sm:$0xff]   ;;  %v369_v58 = vld [vmem:[%s4750_s13 + $0x220] sm:$0xff] }
 0x104   : > { %2265 = vmatprep.subr.bf16.mxu1 %v4206_v59  ;;  %v4221_v59 = vld [vmem:[#allocation4 + $0xc] ss:$16 sps:$4 sm:$0xff]   ;;  %v4991_v7 = vpack.c.bf16 %v369_v58, %v362_v48 }
 0x105   : > { %1971 = vmatmul.mubr.bf16.gmra.mxu0 %v4968_v62  ;;  %v376_v48 = vld [vmem:[%s4750_s13 + $0x258] sm:$0xff] }
 0x106   : > { %3697 = vmatmul.mubr.msk.bf16.gmra.mxu1 %vm1667_vm0, %v4970_v0  ;;  %2153 = vmatpush1.bf16.msra.mxu0 %v4201_v60  ;;  %v4224_v60 = vld [vmem:[#allocation4 + $0x20c] ss:$16 sps:$4 sm:$0xff]   ;;  %5691 = vst [vmem:[#allocation17_spill] sm:$0xff] %v4991_v7 }
 0x107   : > { %2266 = vmatpush1.bf16.msra.mxu1 %v4204_v61  ;;  %2154 = vmatprep.subr.bf16.mxu0 %v4209_v10  ;;  %v4219_v61 = vld [vmem:[#allocation4 + $0x8] ss:$16 sps:$4 sm:$0xff]   ;;  %v361_v10 = vld [vmem:[%s4750_s13 + $0x1e0] sm:$0xff]  ;;  %v4236_v58 = vld [vmem:[#allocation4 + $0x3cc] ss:$16 sps:$4 sm:$0xff]  }
 0x108   : > { %2267 = vmatprep.subr.bf16.mxu1 %v4212_v12  ;;  %1980 = vmatprep.mubr.bf16.mxu0 %v4974_v17  ;;  %v368_v12 = vld [vmem:[%s4750_s13 + $0x218] sm:$0xff]  ;;  %v405_v17 = vld [vmem:[%s4750_s13 + $0x340] sm:$0xff] }
 0x109   : > { %2093 = vmatprep.mubr.bf16.mxu1 %v5659_v42  ;;  %v412_v0 = vld [vmem:[%s4750_s13 + $0x378] sm:$0xff] }
 0x10a   : > { %2155 = vmatpush1.bf16.msra.mxu0 %v4207_v13  ;;  %v370_v13 = vld [vmem:[%s4750_s13 + $0x228] sm:$0xff] }
 0x10b   : > { %2268 = vmatpush1.bf16.msra.mxu1 %v4210_v14  ;;  %2156 = vmatprep.subr.bf16.mxu0 %v4215_v35  ;;  %v4227_v14 = vld [vmem:[#allocation4 + $0x1ec] ss:$16 sps:$4 sm:$0xff]   ;;  %v5002_v35 = vpack.c.bf16 %v368_v12, %v361_v10  ;;  %v377_v10 = vld [vmem:[%s4750_s13 + $0x260] sm:$0xff] }
 0x10c   : > { %2269 = vmatprep.subr.bf16.mxu1 %v4218_v37  ;;  %v5004_v37 = vpack.c.bf16 %v370_v13, %v363_v20  ;;  %v4242_v12 = vld [vmem:[#allocation4 + $0x3ac] ss:$16 sps:$4 sm:$0xff]   ;;  %v5695_v20 = vmov 0   ;;  %v4237_v13 = vld [vmem:[#allocation4 + $0x1a8] ss:$16 sps:$4 sm:$0xff]  }
 0x10d   : > { %1981 = vmatmul.mubr.bf16.gmra.mxu0 %v4985_v43  ;;  %5692 = vst [vmem:[#allocation18_spill] sm:$0xff] %v5002_v35  ;;  %v398_v43 = vld [vmem:[%s4750_s13 + $0x308] sm:$0xff] }
 0x10e   : > { %3698 = vmatmul.mubr.msk.bf16.gmra.mxu1 %vm1667_vm0, %v4987_v46  ;;  %2157 = vmatpush1.bf16.msra.mxu0 %v4213_v39  ;;  %5693 = vst [vmem:[#allocation19_spill] sm:$0xff] %v5004_v37  ;;  %v383_v39 = vld [vmem:[%s4750_s13 + $0x290] sm:$0xff]  ;;  %v382_v46 = vld [vmem:[%s4750_s13 + $0x288] sm:$0xff] }
 0x10f   : > { %2270 = vmatpush1.bf16.msra.mxu1 %v4216_v41  ;;  %2158 = vmatprep.subr.bf16.mxu0 %v4221_v59  ;;  %v4233_v41 = vld [vmem:[#allocation4 + $0x1cc] ss:$16 sps:$4 sm:$0xff]   ;;  %v4231_v59 = vld [vmem:[#allocation4 + $0x1c8] ss:$16 sps:$4 sm:$0xff]  }
 0x110   : > { %2271 = vmatprep.subr.bf16.mxu1 %v4224_v60  ;;  %1990 = vmatprep.mubr.bf16.mxu0 %v4991_v7  ;;  %v4234_v60 = vld [vmem:[#allocation4 + $0x3c8] ss:$16 sps:$4 sm:$0xff]   ;;  %v375_v7 = vld [vmem:[%s4750_s13 + $0x250] sm:$0xff] }
 0x111   : > { %2103 = vmatprep.mubr.bf16.mxu1 %v5659_v42  ;;  %v5008_v42 = vpack.c.bf16 %v383_v39, %v376_v48  ;;  %v397_v39 = vld [vmem:[%s4750_s13 + $0x300] sm:$0xff] }
 0x112   : > { %2159 = vmatpush1.bf16.msra.mxu0 %v4219_v61  ;;  %v384_v61 = vld [vmem:[%s4750_s13 + $0x298] sm:$0xff] }
 0x113   : > { %2272 = vmatpush1.bf16.msra.mxu1 %v4222_v1  ;;  %2160 = vmatprep.subr.bf16.mxu0 %v4227_v14  ;;  %5694 = vst [vmem:[#allocation20_spill] sm:$0xff] %v5008_v42  ;;  %v4239_v1 = vld [vmem:[#allocation4 + $0x1ac] ss:$16 sps:$4 sm:$0xff]   ;;  %v4240_v14 = vld [vmem:[#allocation4 + $0x3a8] ss:$16 sps:$4 sm:$0xff]   ;;  %v5021_v48 = vpack.c.bf16 %v384_v61, %v377_v10  ;;  %v411_v61 = vld [vmem:[%s4750_s13 + $0x370] sm:$0xff] }
 0x114   : > { %2273 = vmatprep.subr.bf16.mxu1 %v4230_v22  ;;  %v5019_v22 = vpack.c.bf16 %v382_v46, %v375_v7  ;;  %v396_v46 = vld [vmem:[%s4750_s13 + $0x2f8] sm:$0xff]  ;;  %v391_v7 = vld [vmem:[%s4750_s13 + $0x2d0] sm:$0xff] }
 0x115   : > { %1991 = vmatmul.mubr.bf16.gmra.mxu0 %v5002_v35  ;;  %5697 = vst [vmem:[#allocation22_spill] sm:$0xff] %v5021_v48  ;;  %v389_v35 = vld [vmem:[%s4750_s13 + $0x2c0] sm:$0xff]  ;;  %v404_v10 = vld [vmem:[%s4750_s13 + $0x338] sm:$0xff] }
 0x116   : > { %3699 = vmatmul.mubr.msk.bf16.gmra.mxu1 %vm1667_vm0, %v5004_v37  ;;  %2161 = vmatpush2.bf16.msra.mxu0 %v4225_v30  ;;  %5696 = vst [vmem:[#allocation21_spill] sm:$0xff] %v5019_v22  ;;  %v4245_v30 = vld [vmem:[#allocation4 + $0x18c] ss:$16 sps:$4 sm:$0xff]  }
 0x117   : > { %2274 = vmatpush2.bf16.msra.mxu1 %v4228_v32  ;;  %2162 = vmatprep.subr.bf16.mxu0 %v4233_v41  ;;  %v390_v32 = vld [vmem:[%s4750_s13 + $0x2c8] sm:$0xff] }
 0x118   : > { %2275 = vmatprep.subr.bf16.mxu1 %v4236_v58  ;;  %2000 = vmatprep.mubr.bf16.mxu0 %v5008_v42  ;;  %v4248_v41 = vld [vmem:[#allocation4 + $0x38c] ss:$16 sps:$4 sm:$0xff]   ;;  %v4243_v58 = vld [vmem:[#allocation4 + $0x188] ss:$16 sps:$4 sm:$0xff]   ;;  %v5025_v37 = vpack.c.bf16 %v397_v39, %v390_v32  ;;  %v5038_v32 = vpack.c.bf16 %v396_v46, %v389_v35  ;;  %v5040_v39 = vpack.c.bf16 %v398_v43, %v391_v7 }
 0x119   : > { %2113 = vmatprep.mubr.bf16.mxu1 %v5695_v20  ;;  %v4246_v42 = vld [vmem:[#allocation4 + $0x388] ss:$16 sps:$4 sm:$0xff]   ;;  %v4263_v43 = vld [vmem:[#allocation4 + $0x12c] ss:$16 sps:$4 sm:$0xff]   ;;  %v5055_v7 = vpack.c.bf16 %v412_v0, %v405_v17 }
 0x11a   : > { %2163 = vmatpush2.bf16.msra.mxu0 %v4231_v59  ;;  %5698 = vst [vmem:[#allocation23_spill] sm:$0xff] %v5025_v37  ;;  %v4251_v59 = vld [vmem:[#allocation4 + $0x16c] ss:$16 sps:$4 sm:$0xff]   ;;  %v4261_v35 = vld [vmem:[#allocation4 + $0x128] ss:$16 sps:$4 sm:$0xff]  }
 0x11b   : > { %2276 = vmatpush2.bf16.msra.mxu1 %v4234_v60  ;;  %2164 = vmatprep.subr.bf16.mxu0 %v4239_v1  ;;  %v4254_v60 = vld [vmem:[#allocation4 + $0x36c] ss:$16 sps:$4 sm:$0xff]   ;;  %v4249_v1 = vld [vmem:[#allocation4 + $0x168] ss:$16 sps:$4 sm:$0xff]  }
 0x11c   : > { %2277 = vmatprep.subr.bf16.mxu1 %v4242_v12  ;;  %v4252_v12 = vld [vmem:[#allocation4 + $0x368] ss:$16 sps:$4 sm:$0xff]   ;;  %v4278_v0 = vld [vmem:[#allocation4 + $0x60c] ss:$16 sps:$4 sm:$0xff]  }
 0x11d   : > { %2001 = vmatmul.mubr.bf16.gmra.mxu0 %v5019_v22  ;;  %v410_v22 = vld [vmem:[%s4750_s13 + $0x368] sm:$0xff] }
 0x11e   : > { %3700 = vmatmul.mubr.msk.bf16.gmra.mxu1 %vm1667_vm0, %v5021_v48  ;;  %2165 = vmatpush2.bf16.msra.mxu0 %v4237_v13  ;;  %v4257_v13 = vld [vmem:[#allocation4 + $0x14c] ss:$16 sps:$4 sm:$0xff]   ;;  %v403_v48 = vld [vmem:[%s4750_s13 + $0x330] sm:$0xff]  ;;  %v4273_v17 = vld [vmem:[#allocation4 + $0x4e8] ss:$16 sps:$4 sm:$0xff]  }
 0x11f   : > { %2278 = vmatpush2.bf16.msra.mxu1 %v4240_v14  ;;  %2166 = vmatprep.subr.bf16.mxu0 %v4245_v30  ;;  %v4260_v14 = vld [vmem:[#allocation4 + $0x34c] ss:$16 sps:$4 sm:$0xff]   ;;  %v4255_v30 = vld [vmem:[#allocation4 + $0x148] ss:$16 sps:$4 sm:$0xff]   ;;  %v5053_v46 = vpack.c.bf16 %v410_v22, %v403_v48 }
 0x120   : > { %2279 = vmatprep.subr.bf16.mxu1 %v4248_v41  ;;  %2010 = vmatprep.mubr.bf16.mxu0 %v5025_v37  ;;  %v4258_v41 = vld [vmem:[#allocation4 + $0x348] ss:$16 sps:$4 sm:$0xff]   ;;  %v5042_v37 = vpack.c.bf16 %v411_v61, %v404_v10  ;;  %v4281_v48 = vld [vmem:[#allocation4 + $0x4cc] ss:$16 sps:$4 sm:$0xff]  }
 0x121   : > { %2123 = vmatprep.mubr.bf16.mxu1 %v5695_v20  ;;  %v4267_v10 = vld [vmem:[#allocation4 + $0x108] ss:$16 sps:$4 sm:$0xff]  }
 0x122   : > { %2167 = vmatpush2.bf16.msra.mxu0 %v4243_v58  ;;  %v4264_v58 = vld [vmem:[#allocation4 + $0x328] ss:$16 sps:$4 sm:$0xff]  }
 0x123   : > { %2280 = vmatpush2.bf16.msra.mxu1 %v4246_v42  ;;  %2168 = vmatprep.subr.bf16.mxu0 %v4251_v59  ;;  %v4266_v42 = vld [vmem:[#allocation4 + $0x32c] ss:$16 sps:$4 sm:$0xff]   ;;  %v4270_v61 = vld [vmem:[#allocation4 + $0x308] ss:$16 sps:$4 sm:$0xff]  }
 0x124   : > { %2281 = vmatprep.subr.bf16.mxu1 %v4254_v60  ;;  %v4269_v59 = vld [vmem:[#allocation4 + $0x10c] ss:$16 sps:$4 sm:$0xff]   ;;  %v4276_v22 = vld [vmem:[#allocation4 + $0x608] ss:$16 sps:$4 sm:$0xff]  }
 0x125   : > { %2011 = vmatmul.mubr.bf16.gmra.mxu0 %v5038_v32  ;;  %v4272_v60 = vld [vmem:[#allocation4 + $0x30c] ss:$16 sps:$4 sm:$0xff]  }
 0x126   : > { %3701 = vmatmul.mubr.msk.bf16.gmra.mxu1 %vm1667_vm0, %v5040_v39  ;;  %2169 = vmatpush2.bf16.msra.mxu0 %v4249_v1  ;;  %v4275_v1 = vld [vmem:[#allocation4 + $0x4ec] ss:$16 sps:$4 sm:$0xff]  }
 0x127   : > { %2282 = vmatpush2.bf16.msra.mxu1 %v4252_v12  ;;  %2170 = vmatprep.subr.bf16.mxu0 %v4257_v13  ;;  %v4279_v12 = vld [vmem:[#allocation4 + $0x4c8] ss:$16 sps:$4 sm:$0xff]   ;;  %v4287_v13 = vld [vmem:[#allocation4 + $0x48c] ss:$16 sps:$4 sm:$0xff]  }
 0x128   : > { %2283 = vmatprep.subr.bf16.mxu1 %v4260_v14  ;;  %2020 = vmatprep.mubr.bf16.mxu0 %v5042_v37 }
 0x129   : > { %2133 = vmatprep.mubr.bf16.mxu1 %v5695_v20 }
 0x12a   : > { %2171 = vmatpush2.bf16.msra.mxu0 %v4255_v30  ;;  %v4323_v30 = vld [vmem:[#allocation4 + $0x50c] ss:$16 sps:$4 sm:$0xff]  }
 0x12b   : > { %2284 = vmatpush2.bf16.msra.mxu1 %v4258_v41  ;;  %2172 = vmatprep.subr.bf16.mxu0 %v4263_v43 }
 0x12c   : > { %2285 = vmatprep.subr.bf16.mxu1 %v4266_v42 }
 0x12d   : > { %2021 = vmatmul.mubr.bf16.gmra.mxu0 %v5053_v46 }
 0x12e   : > { %3702 = vmatmul.mubr.msk.bf16.gmra.mxu1 %vm1667_vm0, %v5055_v7  ;;  %2173 = vmatpush2.bf16.msra.mxu0 %v4261_v35 }
 0x12f   : > { %2286 = vmatpush2.bf16.msra.mxu1 %v4264_v58  ;;  %2174 = vmatprep.subr.bf16.mxu0 %v4269_v59 }
 0x130   : > { %2287 = vmatprep.subr.bf16.mxu1 %v4272_v60  ;;  %2176 = vmatprep.mubr.bf16.mxu0 %v4768_v53  ;;  %v4284_v53 = vld [vmem:[#allocation4 + $0x4ac] ss:$16 sps:$4 sm:$0xff]  }
 0x131   : > { %2289 = vmatprep.mubr.bf16.mxu1 %v4770_v54  ;;  %v4282_v54 = vld [vmem:[#allocation4 + $0x4a8] ss:$16 sps:$4 sm:$0xff]  }
 0x132   : > { %2175 = vmatpush2.bf16.msra.mxu0 %v4267_v10  ;;  %v4327_v10 = vld [vmem:[#allocation7 + $0x30] sm:$0xff]  }
 0x133   : > { %2288 = vmatpush2.bf16.msra.mxu1 %v4270_v61  ;;  %2370 = vmatprep.subr.bf16.mxu0 %v4275_v1 }
 0x134   : > { %2497 = vmatprep.subr.bf16.mxu1 %v4278_v0  ;;  %v4328_v0 = vld [vmem:[#allocation7 + $0x68] sm:$0xff]  }
 0x135   : > { %2177 = vmatmul.mubr.bf16.vlgmr.msra.gmra.mxu0 %v4780_v15  ;;  %v4285_v15 = vld [vmem:[#allocation4 + $0x488] ss:$16 sps:$4 sm:$0xff]  }
 0x136   : > { %2290 = vmatmul.mubr.bf16.vlgmr.msra.gmra.mxu1 %v4782_v16  ;;  %2371 = vmatpush1.bf16.msra.mxu0 %v4273_v17  ;;  %v4290_v16 = vld [vmem:[#allocation4 + $0x46c] ss:$16 sps:$4 sm:$0xff]  }
 0x137   : > { %2498 = vmatpush1.bf16.msra.mxu1 %v4276_v22  ;;  %2372 = vmatprep.subr.bf16.mxu0 %v4281_v48  ;;  %v4329_v48 = vld [vmem:[#allocation7 + $0x28] sm:$0xff]  }
 0x138   : > { %2186 = vmatprep.mubr.bf16.mxu0 %v4786_v21  ;;  %2299 = vmatprep.mubr.bf16.mxu1 %v4788_v23  ;;  %v4288_v21 = vld [vmem:[#allocation4 + $0x468] ss:$16 sps:$4 sm:$0xff]   ;;  %v4293_v23 = vld [vmem:[#allocation4 + $0x44c] ss:$16 sps:$4 sm:$0xff]  }
 0x13a   : > { %2373 = vmatpush1.bf16.msra.mxu0 %v4279_v12  ;;  %v4330_v12 = vld [vmem:[#allocation7 + $0x60] sm:$0xff]  }
 0x13b   : > { %2374 = vmatprep.subr.bf16.mxu0 %v4284_v53 }
 0x13d   : > { %2187 = vmatmul.mubr.bf16.gmra.mxu0 %v4802_v33  ;;  %v4291_v33 = vld [vmem:[#allocation4 + $0x448] ss:$16 sps:$4 sm:$0xff]  }
 0x13e   : > { %2300 = vmatmul.mubr.bf16.gmra.mxu1 %v4804_v34  ;;  %2375 = vmatpush1.bf16.msra.mxu0 %v4282_v54  ;;  %v4296_v34 = vld [vmem:[#allocation4 + $0x42c] ss:$16 sps:$4 sm:$0xff]  }
 0x13f   : > { %2196 = vmatprep.mubr.bf16.mxu0 %v4806_v36  ;;  %2376 = vmatprep.subr.bf16.mxu0 %v4287_v13  ;;  %v4294_v36 = vld [vmem:[#allocation4 + $0x428] ss:$16 sps:$4 sm:$0xff]  }
 0x140   : > { %2309 = vmatprep.mubr.bf16.mxu1 %v4808_v38  ;;  %v4299_v38 = vld [vmem:[#allocation4 + $0x40c] ss:$16 sps:$4 sm:$0xff]  }
 0x142   : > { %2377 = vmatpush1.bf16.msra.mxu0 %v4285_v15 }
 0x143   : > { %2378 = vmatprep.subr.bf16.mxu0 %v4290_v16 }
 0x145   : > { %2197 = vmatmul.mubr.bf16.gmra.mxu0 %v4822_v49  ;;  %v4297_v49 = vld [vmem:[#allocation4 + $0x408] ss:$16 sps:$4 sm:$0xff]  }
 0x146   : > { %2310 = vmatmul.mubr.bf16.gmra.mxu1 %v4824_v50  ;;  %2379 = vmatpush1.bf16.msra.mxu0 %v4288_v21  ;;  %v4302_v50 = vld [vmem:[#allocation4 + $0x5ec] ss:$16 sps:$4 sm:$0xff]   ;;  %v4331_v21 = vld [vmem:[#allocation7 + $0x20] sm:$0xff]  }
 0x147   : > { %2206 = vmatprep.mubr.bf16.mxu0 %v4826_v52  ;;  %2380 = vmatprep.subr.bf16.mxu0 %v4293_v23  ;;  %v4300_v52 = vld [vmem:[#allocation4 + $0x5e8] ss:$16 sps:$4 sm:$0xff]  }
 0x148   : > { %2319 = vmatprep.mubr.bf16.mxu1 %v4828_v56  ;;  %v4305_v56 = vld [vmem:[#allocation4 + $0x5cc] ss:$16 sps:$4 sm:$0xff]  }
 0x14a   : > { %2381 = vmatpush1.bf16.msra.mxu0 %v4291_v33 }
 0x14b   : > { %2382 = vmatprep.subr.bf16.mxu0 %v4296_v34  ;;  %v4332_v34 = vld [vmem:[#allocation7 + $0x58] sm:$0xff]  }
 0x14d   : > { %2207 = vmatmul.mubr.bf16.gmra.mxu0 %v4842_v3  ;;  %v4303_v3 = vld [vmem:[#allocation4 + $0x5c8] ss:$16 sps:$4 sm:$0xff]  }
 0x14e   : > { %2320 = vmatmul.mubr.bf16.gmra.mxu1 %v4844_v4  ;;  %2383 = vmatpush1.bf16.msra.mxu0 %v4294_v36  ;;  %v4308_v4 = vld [vmem:[#allocation4 + $0x5ac] ss:$16 sps:$4 sm:$0xff]  }
 0x14f   : > { %2216 = vmatprep.mubr.bf16.mxu0 %v4846_v6  ;;  %2384 = vmatprep.subr.bf16.mxu0 %v4299_v38  ;;  %v4306_v6 = vld [vmem:[#allocation4 + $0x5a8] ss:$16 sps:$4 sm:$0xff]  }
 0x150   : > { %2329 = vmatprep.mubr.bf16.mxu1 %v4848_v8  ;;  %v4311_v8 = vld [vmem:[#allocation4 + $0x58c] ss:$16 sps:$4 sm:$0xff]  }
 0x152   : > { %2385 = vmatpush1.bf16.msra.mxu0 %v4297_v49  ;;  %v4333_v49 = vld [vmem:[#allocation7 + $0x18] sm:$0xff]  }
 0x153   : > { %2386 = vmatprep.subr.bf16.mxu0 %v4302_v50  ;;  %v4334_v50 = vld [vmem:[#allocation7 + $0x50] sm:$0xff]  }
 0x155   : > { %2217 = vmatmul.mubr.bf16.gmra.mxu0 %v4862_v24  ;;  %v4309_v24 = vld [vmem:[#allocation4 + $0x588] ss:$16 sps:$4 sm:$0xff]  }
 0x156   : > { %2330 = vmatmul.mubr.bf16.gmra.mxu1 %v4864_v25  ;;  %2387 = vmatpush2.bf16.msra.mxu0 %v4300_v52  ;;  %v4314_v25 = vld [vmem:[#allocation4 + $0x56c] ss:$16 sps:$4 sm:$0xff]  }
 0x157   : > { %2226 = vmatprep.mubr.bf16.mxu0 %v4866_v27  ;;  %2388 = vmatprep.subr.bf16.mxu0 %v4305_v56  ;;  %v4312_v27 = vld [vmem:[#allocation4 + $0x568] ss:$16 sps:$4 sm:$0xff]  }
 0x158   : > { %2339 = vmatprep.mubr.bf16.mxu1 %v4868_v29  ;;  %v4317_v29 = vld [vmem:[#allocation4 + $0x54c] ss:$16 sps:$4 sm:$0xff]  }
 0x15a   : > { %2389 = vmatpush2.bf16.msra.mxu0 %v4303_v3  ;;  %v5701_v3 = vld [vmem:[#allocation13_spill] sm:$0xff] }
 0x15b   : > { %2390 = vmatprep.subr.bf16.mxu0 %v4308_v4 }
 0x15d   : > { %2227 = vmatmul.mubr.bf16.gmra.mxu0 %v4882_v44  ;;  %v4315_v44 = vld [vmem:[#allocation4 + $0x548] ss:$16 sps:$4 sm:$0xff]  }
 0x15e   : > { %2340 = vmatmul.mubr.bf16.gmra.mxu1 %v4884_v45  ;;  %2391 = vmatpush2.bf16.msra.mxu0 %v4306_v6  ;;  %v667_v45 = vlaneseq  ;;  %v5702_v6 = vld [vmem:[#allocation14_spill] sm:$0xff] }
 0x15f   : > { %2236 = vmatprep.mubr.bf16.mxu0 %v4886_v47  ;;  %2392 = vmatprep.subr.bf16.mxu0 %v4311_v8  ;;  %v4320_v47 = vld [vmem:[#allocation4 + $0x52c] ss:$16 sps:$4 sm:$0xff]  }
 0x160   : > { %2349 = vmatprep.mubr.bf16.mxu1 %v4888_v51  ;;  %v4318_v51 = vld [vmem:[#allocation4 + $0x528] ss:$16 sps:$4 sm:$0xff]   ;;  %v5090_v14 = vshrl.u32 %v667_v45, 7  ;;  %v4341_v45 = vld [vmem:[#allocation7 + $0xb8] sm:$0xff]  }
 0x162   : > { %2393 = vmatpush2.bf16.msra.mxu0 %v4309_v24  ;;  %5699 = vst [vmem:[#allocation24_spill] sm:$0xff] %v5090_v14  ;;  %v673_v41 = vsub.s32 1, %v5090_v14 }
 0x163   : > { %2394 = vmatprep.subr.bf16.mxu0 %v4314_v25  ;;  %v4335_v25 = vld [vmem:[#allocation7 + $0x10] sm:$0xff]  }
 0x165   : > { %2237 = vmatmul.mubr.bf16.gmra.mxu0 %v4902_v2  ;;  %v4321_v2 = vld [vmem:[#allocation4 + $0x508] ss:$16 sps:$4 sm:$0xff]  }
 0x166   : > { %2350 = vmatmul.mubr.bf16.gmra.mxu1 %v4904_v5  ;;  %2395 = vmatpush2.bf16.msra.mxu0 %v4312_v27  ;;  %v669_v5 = vsub.s32 0, %v5090_v14 }
 0x167   : > { %2246 = vmatprep.mubr.bf16.mxu0 %v4906_v9  ;;  %2396 = vmatprep.subr.bf16.mxu0 %v4317_v29  ;;  %v5097_v9 = vld [vmem:[#allocation6] sm:$0xf] }
 0x168   : > { %2359 = vmatprep.mubr.bf16.mxu1 %v4908_v11  ;;  %5700 = vst [vmem:[#allocation25_spill] sm:$0xff] %v5097_v9  ;;  %v4324_v11 = vld [vmem:[#allocation7 + $0x78] sm:$0xff]   ;;  %v5101_v43 = vrot.slane %v5097_v9, %v669_v5 }
 0x16a   : > { %2397 = vmatpush2.bf16.msra.mxu0 %v4315_v44  ;;  %v4336_v44 = vld [vmem:[#allocation7 + $0x48] sm:$0xff]  }
 0x16b   : > { %2398 = vmatprep.subr.bf16.mxu0 %v4320_v47 }
 0x16d   : > { %2247 = vmatmul.mubr.bf16.gmra.mxu0 %v4920_v26  ;;  %v4325_v26 = vld [vmem:[#allocation7 + $0x38] sm:$0xff]  }
 0x16e   : > { %2360 = vmatmul.mubr.bf16.gmra.mxu1 %v4922_v28  ;;  %2399 = vmatpush2.bf16.msra.mxu0 %v4318_v51  ;;  %v5104_v28 = vrot.slane %v5097_v9, %v673_v41  ;;  %v4338_v41 = vld [vmem:[#allocation7 + $0x40] sm:$0xff]  }
 0x16f   : > { %2402 = vmatprep.mubr.bf16.mxu0 %v4924_v31  ;;  %2400 = vmatprep.subr.bf16.mxu0 %v4323_v30  ;;  %v4326_v31 = vld [vmem:[#allocation7 + $0x70] sm:$0xff]  }
 0x170   : > { %2515 = vmatprep.mubr.bf16.mxu1 %v5695_v20 }
 0x172   : > { %2401 = vmatpush2.bf16.msra.mxu0 %v4321_v2 }
 0x173   : > { %3764 = vmatprep.subr.bf16.mxu0 %v4324_v11  ;;  %v4337_v11 = vld [vmem:[#allocation7 + $0x8] sm:$0xff]  }
 0x175   : > { %v1726_v42 = vpop.f32.mrf.mxu0  ;;  %2403 = vmatmul.mubr.bf16.vlgmr.msra.gmra.mxu0 %v4934_v55 }
 0x176   : > { %v1839_v35 = vpop.f32.mrf.mxu1  ;;  %3703 = vmatmul.mubr.msk.bf16.vlgmr.msra.gmra.mxu1 %vm1667_vm0, %v4936_v57  ;;  %v1727_v58 = vadd.f32 %v1726_v42, %v5101_v43  ;;  %2412 = vmatprep.mubr.bf16.mxu0 %v4940_v63  ;;  %v5703_v42 = vld [vmem:[#allocation15_spill] sm:$0xff] }
 0x177   : > { %2525 = vmatprep.mubr.bf16.mxu1 %v5695_v20  ;;  %v1728_v59 = vpop.f32.mrf.mxu0  ;;  %3765 = vmatpush3.bf16.msra.mxu0 %v4325_v26 }
 0x178   : > { %v1841_v60 = vpop.f32.mrf.mxu1  ;;  %v5112_v61 = vadd.f32 %v1839_v35, %v1727_v58  ;;  %v1729_v1 = vadd.f32 %v1728_v59, %v5104_v28  ;;  %3766 = vmatprep.subr.bf16.mxu0 %v4326_v31  ;;  %v5704_v35 = vld [vmem:[#allocation16_spill] sm:$0xff]  ;;  %v5705_v59 = vld [vmem:[#allocation17_spill] sm:$0xff] }
 0x179   : > { %v5115_v55 = vpop.f32.mrf.mxu0 }
 0x17a   : > { %v5117_v17 = vpop.f32.mrf.mxu1  ;;  %v5119_v57 = vadd.f32 %v1841_v60, %v1729_v1  ;;  %v4339_v1 = vld [vmem:[#allocation7] sm:$0xff]  }
 0x17b   : > { %v5121_v22 = vpop.f32.mrf.mxu0  ;;  %3767 = vmatpush3.bf16.msra.mxu0 %v4327_v10 }
 0x17c   : > { %v5123_v63 = vpop.f32.mrf.mxu1  ;;  %3768 = vmatprep.subr.bf16.mxu0 %v4328_v0 }
 0x17d   : > { %v1736_v53 = vpop.f32.mrf.mxu0  ;;  %2413 = vmatmul.mubr.bf16.gmra.mxu0 %v4952_v18 }
 0x17e   : > { %v1849_v54 = vpop.f32.mrf.mxu1  ;;  %3704 = vmatmul.mubr.msk.bf16.gmra.mxu1 %vm1667_vm0, %v4954_v19  ;;  %v1737_v13 = vadd.f32 %v1736_v53, %v5101_v43  ;;  %2422 = vmatprep.mubr.bf16.mxu0 %v4957_v40  ;;  %v4343_v53 = vld [vmem:[#allocation7 + $0xb0] sm:$0xff]  }
 0x17f   : > { %2535 = vmatprep.mubr.bf16.mxu1 %v5695_v20  ;;  %v1738_v15 = vpop.f32.mrf.mxu0  ;;  %3769 = vmatpush3.bf16.msra.mxu0 %v4329_v48 }
 0x180   : > { %v1851_v16 = vpop.f32.mrf.mxu1  ;;  %v5131_v23 = vadd.f32 %v1849_v54, %v1737_v13  ;;  %v1739_v33 = vadd.f32 %v1738_v15, %v5104_v28  ;;  %3770 = vmatprep.subr.bf16.mxu0 %v4330_v12  ;;  %v4342_v12 = vld [vmem:[#allocation7 + $0xf0] sm:$0xff]  }
 0x181   : > { %v5134_v18 = vpop.f32.mrf.mxu0 }
 0x182   : > { %v5136_v36 = vpop.f32.mrf.mxu1  ;;  %v5138_v19 = vadd.f32 %v1851_v16, %v1739_v33 }
 0x183   : > { %v5140_v38 = vpop.f32.mrf.mxu0  ;;  %3771 = vmatpush3.bf16.msra.mxu0 %v4331_v21 }
 0x184   : > { %v5142_v40 = vpop.f32.mrf.mxu1  ;;  %3772 = vmatprep.subr.bf16.mxu0 %v4332_v34 }
 0x185   : > { %v1746_v52 = vpop.f32.mrf.mxu0  ;;  %2423 = vmatmul.mubr.bf16.gmra.mxu0 %v4968_v62  ;;  %v4340_v62 = vld [vmem:[#allocation7 + $0xf8] sm:$0xff]  }
 0x186   : > { %v1859_v56 = vpop.f32.mrf.mxu1  ;;  %3705 = vmatmul.mubr.msk.bf16.gmra.mxu1 %vm1667_vm0, %v5701_v3  ;;  %v1747_v4 = vadd.f32 %v1746_v52, %v5101_v43  ;;  %2432 = vmatprep.mubr.bf16.mxu0 %v5702_v6 }
 0x187   : > { %2545 = vmatprep.mubr.bf16.mxu1 %v5695_v20  ;;  %v1748_v8 = vpop.f32.mrf.mxu0  ;;  %3773 = vmatpush3.bf16.msra.mxu0 %v4333_v49  ;;  %v5706_v49 = vld [vmem:[#allocation18_spill] sm:$0xff] }
 0x188   : > { %v1861_v24 = vpop.f32.mrf.mxu1  ;;  %v5150_v27 = vadd.f32 %v1859_v56, %v1747_v4  ;;  %v1749_v29 = vadd.f32 %v1748_v8, %v5104_v28  ;;  %3774 = vmatprep.subr.bf16.mxu0 %v4334_v50  ;;  %3828 = vmatprep.subr.bf16.mxu1 %v4340_v62  ;;  %v5707_v50 = vld [vmem:[#allocation19_spill] sm:$0xff]  ;;  %v5708_v56 = vld [vmem:[#allocation20_spill] sm:$0xff] }
 0x189   : > { %v5153_v47 = vpop.f32.mrf.mxu0  ;;  %3829 = vmatpush3.bf16.msra.mxu1 %v4341_v45 }
 0x18a   : > { %v5155_v51 = vpop.f32.mrf.mxu1  ;;  %v5157_v30 = vadd.f32 %v1861_v24, %v1749_v29  ;;  %3830 = vmatprep.subr.bf16.mxu1 %v4342_v12  ;;  %v4344_v24 = vld [vmem:[#allocation7 + $0xe8] sm:$0xff]   ;;  %v4347_v12 = vld [vmem:[#allocation7 + $0xa0] sm:$0xff]  }
 0x18b   : > { %v5159_v2 = vpop.f32.mrf.mxu0  ;;  %3775 = vmatpush3.bf16.msra.mxu0 %v4335_v25  ;;  %v4345_v25 = vld [vmem:[#allocation7 + $0xa8] sm:$0xff]  }
 0x18c   : > { %v5161_v5 = vpop.f32.mrf.mxu1  ;;  %3776 = vmatprep.subr.bf16.mxu0 %v4336_v44 }
 0x18d   : > { %v1756_v26 = vpop.f32.mrf.mxu0  ;;  %2433 = vmatmul.mubr.bf16.gmra.mxu0 %v5703_v42  ;;  %3831 = vmatpush3.bf16.msra.mxu1 %v4343_v53  ;;  %v5710_v42 = vld [vmem:[#allocation22_spill] sm:$0xff] }
 0x18e   : > { %v1869_v31 = vpop.f32.mrf.mxu1  ;;  %3706 = vmatmul.mubr.msk.bf16.gmra.mxu1 %vm1667_vm0, %v5704_v35  ;;  %v1757_v58 = vadd.f32 %v1756_v26, %v5101_v43  ;;  %2442 = vmatprep.mubr.bf16.mxu0 %v5705_v59 }
 0x18f   : > { %2555 = vmatprep.mubr.bf16.mxu1 %v5695_v20  ;;  %v1758_v60 = vpop.f32.mrf.mxu0  ;;  %3777 = vmatpush3.bf16.msra.mxu0 %v4337_v11 }
 0x190   : > { %v1871_v10 = vpop.f32.mrf.mxu1  ;;  %v5169_v0 = vadd.f32 %v1869_v31, %v1757_v58  ;;  %v1759_v48 = vadd.f32 %v1758_v60, %v5104_v28  ;;  %3778 = vmatprep.subr.bf16.mxu0 %v4338_v41  ;;  %3832 = vmatprep.subr.bf16.mxu1 %v4344_v24  ;;  %v5709_v31 = vld [vmem:[#allocation21_spill] sm:$0xff]  ;;  %v5711_v58 = vld [vmem:[#allocation23_spill] sm:$0xff] }
 0x191   : > { %v5172_v54 = vpop.f32.mrf.mxu0  ;;  %3833 = vmatpush3.bf16.msra.mxu1 %v4345_v25 }
 0x192   : > { %v5174_v13 = vpop.f32.mrf.mxu1  ;;  %v5176_v15 = vadd.f32 %v1871_v10, %v1759_v48  ;;  %v4346_v48 = vld [vmem:[#allocation7 + $0xe0] sm:$0xff]  }
 0x193   : > { %v5178_v16 = vpop.f32.mrf.mxu0  ;;  %3779 = vmatpush3.bf16.msra.mxu0 %v4339_v1  ;;  %3834 = vmatprep.subr.bf16.mxu1 %v4346_v48 }
 0x194   : > { %v5180_v21 = vpop.f32.mrf.mxu1 }
 0x195   : > { %v1766_v33 = vpop.f32.mrf.mxu0  ;;  %2443 = vmatmul.mubr.bf16.gmra.mxu0 %v5706_v49  ;;  %3835 = vmatpush3.bf16.msra.mxu1 %v4347_v12  ;;  %v4350_v12 = vld [vmem:[#allocation7 + $0xd0] sm:$0xff]  }
 0x196   : > { %v1879_v34 = vpop.f32.mrf.mxu1  ;;  %3707 = vmatmul.mubr.msk.bf16.gmra.mxu1 %vm1667_vm0, %v5707_v50  ;;  %v1767_v52 = vadd.f32 %v1766_v33, %v5101_v43  ;;  %2452 = vmatprep.mubr.bf16.mxu0 %v5708_v56 }
 0x197   : > { %2565 = vmatprep.mubr.bf16.mxu1 %v5695_v20  ;;  %v1768_v3 = vpop.f32.mrf.mxu0 }
 0x198   : > { %v1881_v4 = vpop.f32.mrf.mxu1  ;;  %v5188_v6 = vadd.f32 %v1879_v34, %v1767_v52  ;;  %v1769_v8 = vadd.f32 %v1768_v3, %v5104_v28 }
 0x199   : > { %v5191_v29 = vpop.f32.mrf.mxu0 }
 0x19a   : > { %v5193_v44 = vpop.f32.mrf.mxu1  ;;  %v5195_v62 = vadd.f32 %v1881_v4, %v1769_v8 }
 0x19b   : > { %v5197_v45 = vpop.f32.mrf.mxu0 }
 0x19c   : > { %v5199_v11 = vpop.f32.mrf.mxu1 }
 0x19d   : > { %v1776_v41 = vpop.f32.mrf.mxu0  ;;  %2453 = vmatmul.mubr.bf16.gmra.mxu0 %v5709_v31 }
 0x19e   : > { %v1889_v26 = vpop.f32.mrf.mxu1  ;;  %3708 = vmatmul.mubr.msk.bf16.gmra.mxu1 %vm1667_vm0, %v5710_v42  ;;  %v1777_v35 = vadd.f32 %v1776_v41, %v5101_v43  ;;  %2462 = vmatprep.mubr.bf16.mxu0 %v5711_v58  ;;  %v4348_v41 = vld [vmem:[#allocation7 + $0xd8] sm:$0xff]  }
 0x19f   : > { %2575 = vmatprep.mubr.bf16.mxu1 %v5695_v20  ;;  %v1778_v59 = vpop.f32.mrf.mxu0  ;;  %3836 = vmatprep.subr.bf16.mxu1 %v4348_v41 }
 0x1a0   : > { %v1891_v60 = vpop.f32.mrf.mxu1  ;;  %v5207_v10 = vadd.f32 %v1889_v26, %v1777_v35  ;;  %v1779_v1 = vadd.f32 %v1778_v59, %v5104_v28  ;;  %v4349_v26 = vld [vmem:[#allocation7 + $0x98] sm:$0xff]  }
 0x1a1   : > { %v5210_v53 = vpop.f32.mrf.mxu0  ;;  %3837 = vmatpush3.bf16.msra.mxu1 %v4349_v26  ;;  %v1733_v26 = vadd.f32 %v5121_v22, %v5104_v28  ;;  %v1741_v22 = vadd.f32 %v5134_v18, %v5101_v43 }
 0x1a2   : > { %v5212_v33 = vpop.f32.mrf.mxu1  ;;  %v5214_v34 = vadd.f32 %v1891_v60, %v1779_v1  ;;  %3838 = vmatprep.subr.bf16.mxu1 %v4350_v12 }
 0x1a3   : > { %v5216_v49 = vpop.f32.mrf.mxu0 }
 0x1a4   : > { %v5218_v50 = vpop.f32.mrf.mxu1 }
 0x1a5   : > { %v1786_v52 = vpop.f32.mrf.mxu0  ;;  %2463 = vmatmul.mubr.bf16.gmra.mxu0 %v5038_v32 }
 0x1a6   : > { %v1899_v56 = vpop.f32.mrf.mxu1  ;;  %3709 = vmatmul.mubr.msk.bf16.gmra.mxu1 %vm1667_vm0, %v5040_v39  ;;  %v1787_v3 = vadd.f32 %v1786_v52, %v5101_v43  ;;  %2472 = vmatprep.mubr.bf16.mxu0 %v5042_v37  ;;  %v4351_v52 = vld [vmem:[#allocation7 + $0x90] sm:$0xff]  }
 0x1a7   : > { %2585 = vmatprep.mubr.bf16.mxu1 %v5695_v20  ;;  %v1788_v4 = vpop.f32.mrf.mxu0  ;;  %3839 = vmatpush3.bf16.msra.mxu1 %v4351_v52  ;;  %v1846_v52 = vadd.f32 %v5123_v63, %v1733_v26 }
 0x1a8   : > { %v1901_v8 = vpop.f32.mrf.mxu1  ;;  %v5226_v24 = vadd.f32 %v1899_v56, %v1787_v3  ;;  %v1789_v25 = vadd.f32 %v1788_v4, %v5104_v28 }
 0x1a9   : > { %v5229_v31 = vpop.f32.mrf.mxu0 }
 0x1aa   : > { %v5231_v32 = vpop.f32.mrf.mxu1  ;;  %v5233_v42 = vadd.f32 %v1901_v8, %v1789_v25  ;;  %v1731_v8 = vadd.f32 %v5115_v55, %v5101_v43  ;;  %v4353_v55 = vld [vmem:[#allocation7 + $0x88] sm:$0xff]  }
 0x1ab   : > { %v5235_v39 = vpop.f32.mrf.mxu0 }
 0x1ac   : > { %v5237_v37 = vpop.f32.mrf.mxu1 }
 0x1ad   : > { %v1796_v20 = vpop.f32.mrf.mxu0  ;;  %2473 = vmatmul.mubr.bf16.gmra.mxu0 %v5053_v46 }
 0x1ae   : > { %v1909_v35 = vpop.f32.mrf.mxu1  ;;  %3710 = vmatmul.mubr.msk.bf16.gmra.mxu1 %vm1667_vm0, %v5055_v7  ;;  %v1797_v58 = vadd.f32 %v1796_v20, %v5101_v43 }
 0x1af   : > { %v1798_v59 = vpop.f32.mrf.mxu0 }
 0x1b0   : > { %v1911_v60 = vpop.f32.mrf.mxu1  ;;  %v5243_v1 = vadd.f32 %v1909_v35, %v1797_v58  ;;  %v1799_v48 = vadd.f32 %v1798_v59, %v5104_v28  ;;  %v1844_v58 = vadd.f32 %v5117_v17, %v1731_v8 }
 0x1b1   : > { %v5246_v56 = vpop.f32.mrf.mxu0 }
 0x1b2   : > { %5712 = vst [vmem:[#allocation13_spill] sm:$0xff] %v5243_v1  ;;  %5713 = vst [vmem:[#allocation14_spill] sm:$0xff] %v5246_v56  ;;  %v5248_v3 = vpop.f32.mrf.mxu1  ;;  %v5250_v4 = vadd.f32 %v1911_v60, %v1799_v48 }
 0x1b3   : > { %5714 = vst [vmem:[#allocation15_spill] sm:$0xff] %v5248_v3  ;;  %v5252_v46 = vpop.f32.mrf.mxu0 }
 0x1b4   : > { %5715 = vst [vmem:[#allocation16_spill] sm:$0xff] %v5250_v4  ;;  %5716 = vst [vmem:[#allocation17_spill] sm:$0xff] %v5252_v46  ;;  %v5254_v7 = vpop.f32.mrf.mxu1 }
 0x1b5   : > { %5717 = vst [vmem:[#allocation18_spill] sm:$0xff] %v5254_v7  ;;  %v1952_v25 = vpop.f32.mrf.mxu0  ;;  %v4352_v7 = vld [vmem:[#allocation7 + $0xc8] sm:$0xff]  }
 0x1b6   : > { %v2065_v41 = vpop.f32.mrf.mxu1  ;;  %v1953_v60 = vadd.f32 %v1952_v25, %v5112_v61  ;;  %3840 = vmatprep.subr.bf16.mxu1 %v4352_v7  ;;  %v1743_v61 = vadd.f32 %v5140_v38, %v5104_v28 }
 0x1b7   : > { %v1954_v20 = vpop.f32.mrf.mxu0  ;;  %3841 = vmatpush3.bf16.msra.mxu1 %v4353_v55 }
 0x1b8   : > { %v2067_v35 = vpop.f32.mrf.mxu1  ;;  %v1955_v59 = vadd.f32 %v1954_v20, %v5119_v57  ;;  %v2066_v17 = vadd.f32 %v2065_v41, %v1953_v60  ;;  %v1856_v38 = vadd.f32 %v5142_v40, %v1743_v61  ;;  %v1753_v40 = vadd.f32 %v5159_v2, %v5104_v28 }
 0x1b9   : > { %v1956_v48 = vpop.f32.mrf.mxu0 }
 0x1ba   : > { %v2069_v12 = vpop.f32.mrf.mxu1  ;;  %v1957_v9 = vadd.f32 %v1956_v48, %v1844_v58  ;;  %v2068_v3 = vadd.f32 %v2067_v35, %v1955_v59  ;;  %v4354_v58 = vld [vmem:[#allocation7 + $0xc0] sm:$0xff]   ;;  %v1854_v48 = vadd.f32 %v5136_v36, %v1741_v22  ;;  %v2596_v7 = vmax.f32 %v2066_v17, 0.0 }
 0x1bb   : > { %v1958_v1 = vpop.f32.mrf.mxu0  ;;  %3842 = vmatprep.subr.bf16.mxu1 %v4354_v58  ;;  %v1751_v36 = vadd.f32 %v5153_v47, %v5101_v43 }
 0x1bc   : > { %v2071_v4 = vpop.f32.mrf.mxu1  ;;  %v2070_v14 = vadd.f32 %v2069_v12, %v1957_v9  ;;  %v1959_v46 = vadd.f32 %v1958_v1, %v1846_v52  ;;  %v2597_v56 = vmax.f32 %v2068_v3, 0.0  ;;  %v4355_v1 = vld [vmem:[#allocation7 + $0x80] sm:$0xff]  }
 0x1bd   : > { %v1962_v57 = vpop.f32.mrf.mxu0  ;;  %3843 = vmatpush3.bf16.msra.mxu1 %v4355_v1 }
 0x1be   : > { %v2075_v8 = vpop.f32.mrf.mxu1  ;;  %v2072_v63 = vadd.f32 %v2071_v4, %v1959_v46  ;;  %v2600_v25 = vmax.f32 %v2070_v14, 0.0  ;;  %v1963_v41 = vadd.f32 %v1962_v57, %v5131_v23 }
 0x1bf   : > { %v1964_v26 = vpop.f32.mrf.mxu0 }
 0x1c0   : > { %v2077_v20 = vpop.f32.mrf.mxu1  ;;  %v2601_v18 = vmax.f32 %v2072_v63, 0.0  ;;  %v1965_v9 = vadd.f32 %v1964_v26, %v5138_v19  ;;  %v2660_v46 = vpack.c.bf16 %v2600_v25, %v2596_v7  ;;  %v2076_v55 = vadd.f32 %v2075_v8, %v1963_v41 }
 0x1c1   : > { %v1966_v35 = vpop.f32.mrf.mxu0  ;;  %v1864_v63 = vadd.f32 %v5155_v51, %v1751_v36 }
 0x1c2   : > { %v2079_v59 = vpop.f32.mrf.mxu1  ;;  %v1967_v4 = vadd.f32 %v1966_v35, %v1854_v48  ;;  %v2661_v14 = vpack.c.bf16 %v2601_v18, %v2597_v56  ;;  %v2078_v3 = vadd.f32 %v2077_v20, %v1965_v9  ;;  %v2604_v20 = vmax.f32 %v2076_v55, 0.0 }
 0x1c3   : > { %v1968_v60 = vpop.f32.mrf.mxu0  ;;  %v1866_v18 = vadd.f32 %v5161_v5, %v1753_v40  ;;  %v1761_v35 = vadd.f32 %v5172_v54, %v5101_v43 }
 0x1c4   : > { %v2081_v12 = vpop.f32.mrf.mxu1  ;;  %v2080_v19 = vadd.f32 %v2079_v59, %v1967_v4  ;;  %v1969_v52 = vadd.f32 %v1968_v60, %v1856_v38  ;;  %2987 = vmatprep.mubr.bf16.mxu0 %v2661_v14  ;;  %v2605_v25 = vmax.f32 %v2078_v3, 0.0 }
 0x1c5   : > { %v1972_v23 = vpop.f32.mrf.mxu0  ;;  %2988 = vmatmul.mubr.bf16.vlgmr.msra.gmra.mxu0 %v2660_v46  ;;  %v1874_v36 = vadd.f32 %v5174_v13, %v1761_v35 }
 0x1c6   : > { %v2085_v22 = vpop.f32.mrf.mxu1  ;;  %v2082_v17 = vadd.f32 %v2081_v12, %v1969_v52  ;;  %v2608_v56 = vmax.f32 %v2080_v19, 0.0  ;;  %v1973_v58 = vadd.f32 %v1972_v23, %v5150_v27  ;;  %v1763_v27 = vadd.f32 %v5178_v16, %v5104_v28 }
 0x1c7   : > { %v1974_v57 = vpop.f32.mrf.mxu0 }
 0x1c8   : > { %v2087_v61 = vpop.f32.mrf.mxu1  ;;  %v2609_v26 = vmax.f32 %v2082_v17, 0.0  ;;  %v1975_v47 = vadd.f32 %v1974_v57, %v5157_v30  ;;  %v2664_v2 = vpack.c.bf16 %v2608_v56, %v2604_v20  ;;  %v2086_v30 = vadd.f32 %v2085_v22, %v1973_v58 }
 0x1c9   : > { %v1976_v8 = vpop.f32.mrf.mxu0  ;;  %v1876_v40 = vadd.f32 %v5180_v21, %v1763_v27 }
 0x1ca   : > { %v2089_v48 = vpop.f32.mrf.mxu1  ;;  %v1977_v9 = vadd.f32 %v1976_v8, %v1864_v63  ;;  %v2665_v1 = vpack.c.bf16 %v2609_v26, %v2605_v25  ;;  %v2088_v51 = vadd.f32 %v2087_v61, %v1975_v47  ;;  %v2612_v52 = vmax.f32 %v2086_v30, 0.0 }
 0x1cb   : > { %v1978_v7 = vpop.f32.mrf.mxu0  ;;  %v1771_v63 = vadd.f32 %v5191_v29, %v5101_v43 }
 0x1cc   : > { %v2091_v41 = vpop.f32.mrf.mxu1  ;;  %v2090_v59 = vadd.f32 %v2089_v48, %v1977_v9  ;;  %v1979_v38 = vadd.f32 %v1978_v7, %v1866_v18  ;;  %2995 = vmatprep.mubr.bf16.mxu0 %v2665_v1  ;;  %v2613_v3 = vmax.f32 %v2088_v51, 0.0 }
 0x1cd   : > { %v1982_v4 = vpop.f32.mrf.mxu0  ;;  %2996 = vmatmul.mubr.bf16.gmra.mxu0 %v2664_v2  ;;  %v1884_v18 = vadd.f32 %v5193_v44, %v1771_v63  ;;  %v1791_v63 = vadd.f32 %v5229_v31, %v5101_v43 }
 0x1ce   : > { %v2095_v14 = vpop.f32.mrf.mxu1  ;;  %v2092_v5 = vadd.f32 %v2091_v41, %v1979_v38  ;;  %v2616_v46 = vmax.f32 %v2090_v59, 0.0  ;;  %v1983_v55 = vadd.f32 %v1982_v4, %v5169_v0  ;;  %v1773_v0 = vadd.f32 %v5197_v45, %v5104_v28 }
 0x1cf   : > { %v1984_v60 = vpop.f32.mrf.mxu0 }
 0x1d0   : > { %v2097_v12 = vpop.f32.mrf.mxu1  ;;  %v2617_v19 = vmax.f32 %v2092_v5, 0.0  ;;  %v1985_v54 = vadd.f32 %v1984_v60, %v5176_v15  ;;  %v2668_v16 = vpack.c.bf16 %v2616_v46, %v2612_v52  ;;  %v2096_v15 = vadd.f32 %v2095_v14, %v1983_v55 }
 0x1d1   : > { %v1986_v23 = vpop.f32.mrf.mxu0  ;;  %v1886_v51 = vadd.f32 %v5199_v11, %v1773_v0  ;;  %v1781_v14 = vadd.f32 %v5210_v53, %v5101_v43 }
 0x1d2   : > { %v2099_v22 = vpop.f32.mrf.mxu1  ;;  %v1987_v17 = vadd.f32 %v1986_v23, %v1874_v36  ;;  %v2669_v56 = vpack.c.bf16 %v2617_v19, %v2613_v3  ;;  %v2098_v13 = vadd.f32 %v2097_v12, %v1985_v54  ;;  %v2620_v2 = vmax.f32 %v2096_v15, 0.0 }
 0x1d3   : > { %v1988_v57 = vpop.f32.mrf.mxu0  ;;  %v1894_v19 = vadd.f32 %v5212_v33, %v1781_v14 }
 0x1d4   : > { %v2101_v61 = vpop.f32.mrf.mxu1  ;;  %v2100_v25 = vadd.f32 %v2099_v22, %v1987_v17  ;;  %v1989_v26 = vadd.f32 %v1988_v57, %v1876_v40  ;;  %3003 = vmatprep.mubr.bf16.mxu0 %v2669_v56  ;;  %v2621_v9 = vmax.f32 %v2098_v13, 0.0 }
 0x1d5   : > { %v1992_v47 = vpop.f32.mrf.mxu0  ;;  %3004 = vmatmul.mubr.bf16.gmra.mxu0 %v2668_v16 }
 0x1d6   : > { %v2105_v20 = vpop.f32.mrf.mxu1  ;;  %v2102_v21 = vadd.f32 %v2101_v61, %v1989_v26  ;;  %v2624_v58 = vmax.f32 %v2100_v25, 0.0  ;;  %v1993_v7 = vadd.f32 %v1992_v47, %v5188_v6  ;;  %v1783_v6 = vadd.f32 %v5216_v49, %v5104_v28 }
 0x1d7   : > { %v1994_v8 = vpop.f32.mrf.mxu0 }
 0x1d8   : > { %v2107_v48 = vpop.f32.mrf.mxu1  ;;  %v2625_v1 = vmax.f32 %v2102_v21, 0.0  ;;  %v1995_v29 = vadd.f32 %v1994_v8, %v5195_v62  ;;  %v2672_v45 = vpack.c.bf16 %v2624_v58, %v2620_v2  ;;  %v2106_v62 = vadd.f32 %v2105_v20, %v1993_v7 }
 0x1d9   : > { %v1996_v41 = vpop.f32.mrf.mxu0  ;;  %v1896_v17 = vadd.f32 %v5218_v50, %v1783_v6  ;;  %v1904_v21 = vadd.f32 %v5231_v32, %v1791_v63 }
 0x1da   : > { %v2109_v35 = vpop.f32.mrf.mxu1  ;;  %v1997_v59 = vadd.f32 %v1996_v41, %v1884_v18  ;;  %v2673_v38 = vpack.c.bf16 %v2625_v1, %v2621_v9  ;;  %v2108_v44 = vadd.f32 %v2107_v48, %v1995_v29  ;;  %v2628_v55 = vmax.f32 %v2106_v62, 0.0 }
 0x1db   : > { %v1998_v30 = vpop.f32.mrf.mxu0 }
 0x1dc   : > { %v2111_v4 = vpop.f32.mrf.mxu1  ;;  %v2110_v27 = vadd.f32 %v2109_v35, %v1997_v59  ;;  %v1999_v5 = vadd.f32 %v1998_v30, %v1886_v51  ;;  %3011 = vmatprep.mubr.bf16.mxu0 %v2673_v38  ;;  %v2629_v54 = vmax.f32 %v2108_v44, 0.0  ;;  %v5718_v51 = vld [vmem:[#allocation14_spill] sm:$0xff]  ;;  %v5720_v44 = vld [vmem:[#allocation24_spill] sm:$0xff] }
 0x1dd   : > { %v2002_v46 = vpop.f32.mrf.mxu0  ;;  %3012 = vmatmul.mubr.bf16.gmra.mxu0 %v2672_v45  ;;  %v1801_v59 = vadd.f32 %v5718_v51, %v5101_v43  ;;  %v5721_v43 = vld [vmem:[#allocation15_spill] sm:$0xff] }
 0x1de   : > { %v2115_v60 = vpop.f32.mrf.mxu1  ;;  %v2112_v11 = vadd.f32 %v2111_v4, %v1999_v5  ;;  %v2632_v12 = vmax.f32 %v2110_v27, 0.0  ;;  %v2003_v23 = vadd.f32 %v2002_v46, %v5207_v10  ;;  %v1793_v10 = vadd.f32 %v5235_v39, %v5104_v28 }
 0x1df   : > { %v2004_v36 = vpop.f32.mrf.mxu0  ;;  %v677_v27 = vsub.s32 2, %v5720_v44  ;;  %v1914_v6 = vadd.f32 %v5721_v43, %v1801_v59 }
 0x1e0   : > { %v2117_v3 = vpop.f32.mrf.mxu1  ;;  %v2633_v52 = vmax.f32 %v2112_v11, 0.0  ;;  %v2005_v53 = vadd.f32 %v2004_v36, %v5214_v34  ;;  %v2676_v49 = vpack.c.bf16 %v2632_v12, %v2628_v55  ;;  %v2116_v34 = vadd.f32 %v2115_v60, %v2003_v23  ;;  %v5722_v36 = vld [vmem:[#allocation16_spill] sm:$0xff] }
 0x1e1   : > { %v2006_v22 = vpop.f32.mrf.mxu0  ;;  %v1906_v29 = vadd.f32 %v5237_v37, %v1793_v10  ;;  %v681_v60 = vsub.s32 3, %v5720_v44 }
 0x1e2   : > { %v2119_v40 = vpop.f32.mrf.mxu1  ;;  %v2677_v56 = vpack.c.bf16 %v2633_v52, %v2629_v54  ;;  %v2007_v16 = vadd.f32 %v2006_v22, %v1894_v19  ;;  %v2118_v33 = vadd.f32 %v2117_v3, %v2005_v53  ;;  %v2636_v48 = vmax.f32 %v2116_v34, 0.0  ;;  %v5723_v54 = vld [vmem:[#allocation13_spill] sm:$0xff] }
 0x1e3   : > { %v2008_v57 = vpop.f32.mrf.mxu0 }
 0x1e4   : > { %v2121_v61 = vpop.f32.mrf.mxu1  ;;  %v2120_v13 = vadd.f32 %v2119_v40, %v2007_v16  ;;  %v2009_v25 = vadd.f32 %v2008_v57, %v1896_v17  ;;  %3019 = vmatprep.mubr.bf16.mxu0 %v2677_v56  ;;  %v2637_v58 = vmax.f32 %v2118_v33, 0.0  ;;  %v5725_v17 = vld [vmem:[#allocation25_spill] sm:$0xff] }
 0x1e5   : > { %v2012_v26 = vpop.f32.mrf.mxu0  ;;  %3020 = vmatmul.mubr.bf16.gmra.mxu0 %v2676_v49  ;;  %v5323_v56 = vrot.slane %v5725_v17, %v677_v27 }
 0x1e6   : > { %v2125_v15 = vpop.f32.mrf.mxu1  ;;  %v2122_v50 = vadd.f32 %v2121_v61, %v2009_v25  ;;  %v2640_v47 = vmax.f32 %v2120_v13, 0.0  ;;  %v2013_v18 = vadd.f32 %v2012_v26, %v5226_v24  ;;  %v5719_v24 = vld [vmem:[#allocation17_spill] sm:$0xff]  ;;  %v5326_v13 = vrot.slane %v5725_v17, %v681_v60 }
 0x1e7   : > { %v2014_v20 = vpop.f32.mrf.mxu0  ;;  %v1803_v14 = vadd.f32 %v5719_v24, %v5104_v28  ;;  %v5724_v28 = vld [vmem:[#allocation18_spill] sm:$0xff] }
 0x1e8   : > { %v2127_v0 = vpop.f32.mrf.mxu1  ;;  %v2641_v8 = vmax.f32 %v2122_v50, 0.0  ;;  %v2015_v31 = vadd.f32 %v2014_v20, %v5233_v42  ;;  %v2680_v39 = vpack.c.bf16 %v2640_v47, %v2636_v48  ;;  %v2126_v42 = vadd.f32 %v2125_v15, %v2013_v18 }
 0x1e9   : > { %v2016_v9 = vpop.f32.mrf.mxu0  ;;  %v1916_v23 = vadd.f32 %v5724_v28, %v1803_v14 }
 0x1ea   : > { %v2129_v1 = vpop.f32.mrf.mxu1  ;;  %v2681_v2 = vpack.c.bf16 %v2641_v8, %v2637_v58  ;;  %v2017_v7 = vadd.f32 %v2016_v9, %v1904_v21  ;;  %v2128_v32 = vadd.f32 %v2127_v0, %v2015_v31  ;;  %v2644_v19 = vmax.f32 %v2126_v42, 0.0 }
 0x1eb   : > { %v2018_v41 = vpop.f32.mrf.mxu0 }
 0x1ec   : > { %v2131_v35 = vpop.f32.mrf.mxu1  ;;  %v2130_v38 = vadd.f32 %v2129_v1, %v2017_v7  ;;  %v2019_v45 = vadd.f32 %v2018_v41, %v1906_v29  ;;  %3027 = vmatprep.mubr.bf16.mxu0 %v2681_v2  ;;  %v2645_v11 = vmax.f32 %v2128_v32, 0.0 }
 0x1ed   : > { %v2022_v30 = vpop.f32.mrf.mxu0  ;;  %3028 = vmatmul.mubr.bf16.gmra.mxu0 %v2680_v39 }
 0x1ee   : > { %v2135_v4 = vpop.f32.mrf.mxu1  ;;  %v2132_v37 = vadd.f32 %v2131_v35, %v2019_v45  ;;  %v2648_v5 = vmax.f32 %v2130_v38, 0.0  ;;  %v2023_v52 = vadd.f32 %v2022_v30, %v5723_v54 }
 0x1ef   : > { %v2024_v62 = vpop.f32.mrf.mxu0 }
 0x1f0   : > { %v2137_v46 = vpop.f32.mrf.mxu1  ;;  %v2649_v12 = vmax.f32 %v2132_v37, 0.0  ;;  %v2025_v3 = vadd.f32 %v2024_v62, %v5722_v36  ;;  %v2684_v16 = vpack.c.bf16 %v2648_v5, %v2644_v19  ;;  %v2136_v25 = vadd.f32 %v2135_v4, %v2023_v52 }
 0x1f1   : > { %v2026_v53 = vpop.f32.mrf.mxu0 }
 0x1f2   : > { %v2139_v55 = vpop.f32.mrf.mxu1  ;;  %v2685_v22 = vpack.c.bf16 %v2649_v12, %v2645_v11  ;;  %v2027_v40 = vadd.f32 %v2026_v53, %v1914_v6  ;;  %v2138_v61 = vadd.f32 %v2137_v46, %v2025_v3  ;;  %v2652_v31 = vmax.f32 %v2136_v25, 0.0 }
 0x1f3   : > { %v2028_v49 = vpop.f32.mrf.mxu0 }
 0x1f4   : > { %v2141_v57 = vpop.f32.mrf.mxu1  ;;  %v2140_v63 = vadd.f32 %v2139_v55, %v2027_v40  ;;  %v2029_v33 = vadd.f32 %v2028_v49, %v1916_v23  ;;  %3035 = vmatprep.mubr.bf16.mxu0 %v2685_v22  ;;  %v2653_v0 = vmax.f32 %v2138_v61, 0.0 }
 0x1f5   : > { %v2178_v34 = vpop.f32.mrf.mxu0  ;;  %3036 = vmatmul.mubr.bf16.gmra.mxu0 %v2684_v16 }
 0x1f6   : > { %v2291_v26 = vpop.f32.mrf.mxu1  ;;  %v2142_v15 = vadd.f32 %v2141_v57, %v2029_v33  ;;  %v2179_v10 = vadd.f32 %v2178_v34, %v5323_v56  ;;  %v2656_v50 = vmax.f32 %v2140_v63, 0.0 }
 0x1f7   : > { %v2180_v47 = vpop.f32.mrf.mxu0 }
 0x1f8   : > { %v2293_v20 = vpop.f32.mrf.mxu1  ;;  %v2657_v21 = vmax.f32 %v2142_v15, 0.0  ;;  %v5329_v58 = vadd.f32 %v2291_v26, %v2179_v10  ;;  %v2181_v8 = vadd.f32 %v2180_v47, %v5326_v13  ;;  %v2688_v29 = vpack.c.bf16 %v2656_v50, %v2652_v31 }
 0x1f9   : > { %v5332_v48 = vpop.f32.mrf.mxu0 }
 0x1fa   : > { %v5334_v18 = vpop.f32.mrf.mxu1  ;;  %v2689_v9 = vpack.c.bf16 %v2657_v21, %v2653_v0  ;;  %v5336_v1 = vadd.f32 %v2293_v20, %v2181_v8 }
 0x1fb   : > { %v5338_v2 = vpop.f32.mrf.mxu0 }
 0x1fc   : > { %v5340_v7 = vpop.f32.mrf.mxu1  ;;  %3043 = vmatprep.mubr.bf16.mxu0 %v2689_v9 }
 0x1fd   : > { %v2188_v39 = vpop.f32.mrf.mxu0  ;;  %3044 = vmatmul.mubr.bf16.gmra.mxu0 %v2688_v29 }
 0x1fe   : > { %v2301_v41 = vpop.f32.mrf.mxu1  ;;  %v2189_v35 = vadd.f32 %v2188_v39, %v5323_v56 }
 0x1ff   : > { %v2190_v51 = vpop.f32.mrf.mxu0 }
 0x200   : > { %v2303_v59 = vpop.f32.mrf.mxu1  ;;  %v5343_v32 = vadd.f32 %v2301_v41, %v2189_v35  ;;  %v2191_v38 = vadd.f32 %v2190_v51, %v5326_v13 }
 0x201   : > { %v5346_v45 = vpop.f32.mrf.mxu0 }
 0x202   : > { %v5348_v42 = vpop.f32.mrf.mxu1  ;;  %v5350_v30 = vadd.f32 %v2303_v59, %v2191_v38 }
 0x203   : > { %v5352_v4 = vpop.f32.mrf.mxu0 }
 0x204   : > { %v5354_v24 = vpop.f32.mrf.mxu1 }
 0x205   : > { %v2198_v14 = vpop.f32.mrf.mxu0 }
 0x206   : > { %v2311_v37 = vpop.f32.mrf.mxu1  ;;  %v2199_v44 = vadd.f32 %v2198_v14, %v5323_v56 }
 0x207   : > { %v2200_v27 = vpop.f32.mrf.mxu0 }
 0x208   : > { %v2313_v5 = vpop.f32.mrf.mxu1  ;;  %v5357_v62 = vadd.f32 %v2311_v37, %v2199_v44  ;;  %v2201_v46 = vadd.f32 %v2200_v27, %v5326_v13 }
 0x209   : > { %v5360_v60 = vpop.f32.mrf.mxu0 }
 0x20a   : > { %v5362_v43 = vpop.f32.mrf.mxu1  ;;  %v5364_v6 = vadd.f32 %v2313_v5, %v2201_v46 }
 0x20b   : > { %v5366_v11 = vpop.f32.mrf.mxu0 }
 0x20c   : > { %v5368_v12 = vpop.f32.mrf.mxu1 }
 0x20d   : > { %v2208_v36 = vpop.f32.mrf.mxu0 }
 0x20e   : > { %v2321_v3 = vpop.f32.mrf.mxu1  ;;  %v2209_v19 = vadd.f32 %v2208_v36, %v5323_v56 }
 0x20f   : > { %v2210_v54 = vpop.f32.mrf.mxu0 }
 0x210   : > { %v2323_v52 = vpop.f32.mrf.mxu1  ;;  %v5371_v53 = vadd.f32 %v2321_v3, %v2209_v19  ;;  %v2211_v55 = vadd.f32 %v2210_v54, %v5326_v13 }
 0x211   : > { %v5374_v28 = vpop.f32.mrf.mxu0 }
 0x212   : > { %v5376_v23 = vpop.f32.mrf.mxu1  ;;  %v5378_v22 = vadd.f32 %v2323_v52, %v2211_v55 }
 0x213   : > { %v5380_v40 = vpop.f32.mrf.mxu0 }
 0x214   : > { %v5382_v17 = vpop.f32.mrf.mxu1 }
 0x215   : > { %v2218_v16 = vpop.f32.mrf.mxu0 }
 0x216   : > { %v2331_v49 = vpop.f32.mrf.mxu1  ;;  %v2219_v57 = vadd.f32 %v2218_v16, %v5323_v56 }
 0x217   : > { %v2220_v61 = vpop.f32.mrf.mxu0 }
 0x218   : > { %v2333_v63 = vpop.f32.mrf.mxu1  ;;  %v5385_v33 = vadd.f32 %v2331_v49, %v2219_v57  ;;  %v2221_v25 = vadd.f32 %v2220_v61, %v5326_v13 }
 0x219   : > { %v5388_v34 = vpop.f32.mrf.mxu0 }
 0x21a   : > { %v5390_v26 = vpop.f32.mrf.mxu1  ;;  %v5392_v15 = vadd.f32 %v2333_v63, %v2221_v25 }
 0x21b   : > { %v5394_v10 = vpop.f32.mrf.mxu0 }
 0x21c   : > { %v5396_v50 = vpop.f32.mrf.mxu1 }
 0x21d   : > { %v2228_v47 = vpop.f32.mrf.mxu0 }
 0x21e   : > { %v2341_v20 = vpop.f32.mrf.mxu1  ;;  %v2229_v0 = vadd.f32 %v2228_v47, %v5323_v56 }
 0x21f   : > { %v2230_v21 = vpop.f32.mrf.mxu0 }
 0x220   : > { %v2343_v8 = vpop.f32.mrf.mxu1  ;;  %v5399_v31 = vadd.f32 %v2341_v20, %v2229_v0  ;;  %v2231_v9 = vadd.f32 %v2230_v21, %v5326_v13 }
 0x221   : > { %v5402_v29 = vpop.f32.mrf.mxu0 }
 0x222   : > { %v5404_v39 = vpop.f32.mrf.mxu1  ;;  %v5406_v41 = vadd.f32 %v2343_v8, %v2231_v9  ;;  %v2183_v8 = vadd.f32 %v5332_v48, %v5323_v56 }
 0x223   : > { %v5408_v35 = vpop.f32.mrf.mxu0 }
 0x224   : > { %v5410_v51 = vpop.f32.mrf.mxu1 }
 0x225   : > { %v2238_v59 = vpop.f32.mrf.mxu0 }
 0x226   : > { %v2351_v38 = vpop.f32.mrf.mxu1  ;;  %v2239_v14 = vadd.f32 %v2238_v59, %v5323_v56 }
 0x227   : > { %v2240_v37 = vpop.f32.mrf.mxu0 }
 0x228   : > { %v2353_v44 = vpop.f32.mrf.mxu1  ;;  %v5413_v27 = vadd.f32 %v2351_v38, %v2239_v14  ;;  %v2241_v5 = vadd.f32 %v2240_v37, %v5326_v13  ;;  %v2185_v38 = vadd.f32 %v5338_v2, %v5326_v13 }
 0x229   : > { %v5416_v46 = vpop.f32.mrf.mxu0 }
 0x22a   : > { %v5418_v36 = vpop.f32.mrf.mxu1  ;;  %v5420_v3 = vadd.f32 %v2353_v44, %v2241_v5  ;;  %v2296_v44 = vadd.f32 %v5334_v18, %v2183_v8 }
 0x22b   : > { %v5422_v19 = vpop.f32.mrf.mxu0 }
 0x22c   : > { %v5424_v54 = vpop.f32.mrf.mxu1 }
 0x22d   : > { %v2248_v52 = vpop.f32.mrf.mxu0 }
 0x22e   : > { %v2361_v55 = vpop.f32.mrf.mxu1  ;;  %v2249_v16 = vadd.f32 %v2248_v52, %v5323_v56 }
 0x22f   : > { %v2250_v49 = vpop.f32.mrf.mxu0 }
 0x230   : > { %v2363_v57 = vpop.f32.mrf.mxu1  ;;  %v5427_v61 = vadd.f32 %v2361_v55, %v2249_v16  ;;  %v2251_v63 = vadd.f32 %v2250_v49, %v5326_v13  ;;  %v2298_v49 = vadd.f32 %v5340_v7, %v2185_v38 }
 0x231   : > { %v5430_v25 = vpop.f32.mrf.mxu0 }
 0x232   : > { %5726 = vst [vmem:[#allocation19_spill] sm:$0xff] %v5427_v61  ;;  %v5432_v47 = vpop.f32.mrf.mxu1  ;;  %v5434_v20 = vadd.f32 %v2363_v57, %v2251_v63 }
 0x233   : > { %5727 = vst [vmem:[#allocation20_spill] sm:$0xff] %v5432_v47  ;;  %v5436_v0 = vpop.f32.mrf.mxu0 }
 0x234   : > { %5728 = vst [vmem:[#allocation21_spill] sm:$0xff] %v5434_v20  ;;  %5729 = vst [vmem:[#allocation22_spill] sm:$0xff] %v5436_v0  ;;  %v5438_v21 = vpop.f32.mrf.mxu1 }
 0x235   : > { %5730 = vst [vmem:[#allocation23_spill] sm:$0xff] %v5438_v21  ;;  %v2404_v9 = vpop.f32.mrf.mxu0  ;;  %v2193_v21 = vadd.f32 %v5346_v45, %v5323_v56 }
 0x236   : > { %v2517_v59 = vpop.f32.mrf.mxu1  ;;  %v2405_v52 = vadd.f32 %v2404_v9, %v5329_v58 }
 0x237   : > { %v2406_v14 = vpop.f32.mrf.mxu0  ;;  %v2306_v7 = vadd.f32 %v5348_v42, %v2193_v21 }
 0x238   : > { %v2519_v37 = vpop.f32.mrf.mxu1  ;;  %v2407_v5 = vadd.f32 %v2406_v14, %v5336_v1  ;;  %v2518_v47 = vadd.f32 %v2517_v59, %v2405_v52  ;;  %v2195_v1 = vadd.f32 %v5352_v4, %v5326_v13 }
 0x239   : > { %v2408_v55 = vpop.f32.mrf.mxu0 }
 0x23a   : > { %v2521_v16 = vpop.f32.mrf.mxu1  ;;  %v2409_v57 = vadd.f32 %v2408_v55, %v2296_v44  ;;  %v2520_v61 = vadd.f32 %v2519_v37, %v2407_v5  ;;  %v2598_v45 = vmax.f32 %v2518_v47, 0.0  ;;  %v2308_v52 = vadd.f32 %v5354_v24, %v2195_v1 }
 0x23b   : > { %v2410_v63 = vpop.f32.mrf.mxu0 }
 0x23c   : > { %v2523_v48 = vpop.f32.mrf.mxu1  ;;  %v2522_v2 = vadd.f32 %v2521_v16, %v2409_v57  ;;  %v2411_v20 = vadd.f32 %v2410_v63, %v2298_v49  ;;  %v2599_v38 = vmax.f32 %v2520_v61, 0.0  ;;  %v2203_v63 = vadd.f32 %v5360_v60, %v5323_v56 }
 0x23d   : > { %v2414_v0 = vpop.f32.mrf.mxu0 }
 0x23e   : > { %v2527_v18 = vpop.f32.mrf.mxu1  ;;  %v2524_v58 = vadd.f32 %v2523_v48, %v2411_v20  ;;  %v2602_v8 = vmax.f32 %v2522_v2, 0.0  ;;  %v2415_v37 = vadd.f32 %v2414_v0, %v5343_v32  ;;  %v2205_v32 = vadd.f32 %v5366_v11, %v5326_v13 }
 0x23f   : > { %v2416_v9 = vpop.f32.mrf.mxu0 }
 0x240   : > { %v2529_v14 = vpop.f32.mrf.mxu1  ;;  %v2603_v44 = vmax.f32 %v2524_v58, 0.0  ;;  %v2417_v55 = vadd.f32 %v2416_v9, %v5350_v30  ;;  %v2662_v4 = vpack.c.bf16 %v2602_v8, %v2598_v45  ;;  %v2528_v30 = vadd.f32 %v2527_v18, %v2415_v37 }
 0x241   : > { %v2418_v5 = vpop.f32.mrf.mxu0  ;;  %v2316_v58 = vadd.f32 %v5362_v43, %v2203_v63 }
 0x242   : > { %v2531_v59 = vpop.f32.mrf.mxu1  ;;  %v2663_v16 = vpack.c.bf16 %v2603_v44, %v2599_v38  ;;  %v2419_v49 = vadd.f32 %v2418_v5, %v2306_v7  ;;  %v2530_v42 = vadd.f32 %v2529_v14, %v2417_v55  ;;  %v2606_v14 = vmax.f32 %v2528_v30, 0.0 }
 0x243   : > { %v2420_v20 = vpop.f32.mrf.mxu0  ;;  %v2318_v44 = vadd.f32 %v5368_v12, %v2205_v32 }
 0x244   : > { %v2533_v57 = vpop.f32.mrf.mxu1  ;;  %v2532_v61 = vadd.f32 %v2531_v59, %v2419_v49  ;;  %v2421_v21 = vadd.f32 %v2420_v20, %v2308_v52  ;;  %3084 = vmatprep.mubr.bf16.mxu1 %v2663_v16  ;;  %v2607_v8 = vmax.f32 %v2530_v42, 0.0  ;;  %v2213_v59 = vadd.f32 %v5374_v28, %v5323_v56 }
 0x245   : > { %v2424_v47 = vpop.f32.mrf.mxu0  ;;  %3085 = vmatmul.mubr.bf16.vlgmr.msra.gmra.mxu1 %v2662_v4 }
 0x246   : > { %v2537_v48 = vpop.f32.mrf.mxu1  ;;  %v2534_v24 = vadd.f32 %v2533_v57, %v2421_v21  ;;  %v2610_v0 = vmax.f32 %v2532_v61, 0.0  ;;  %v2425_v7 = vadd.f32 %v2424_v47, %v5357_v62  ;;  %v2215_v62 = vadd.f32 %v5380_v40, %v5326_v13 }
 0x247   : > { %v2426_v2 = vpop.f32.mrf.mxu0  ;;  %v2326_v42 = vadd.f32 %v5376_v23, %v2213_v59 }
 0x248   : > { %v2539_v1 = vpop.f32.mrf.mxu1  ;;  %v2611_v9 = vmax.f32 %v2534_v24, 0.0  ;;  %v2427_v60 = vadd.f32 %v2426_v2, %v5364_v6  ;;  %v2666_v11 = vpack.c.bf16 %v2610_v0, %v2606_v14  ;;  %v2538_v6 = vadd.f32 %v2537_v48, %v2425_v7 }
 0x249   : > { %v2428_v18 = vpop.f32.mrf.mxu0  ;;  %v2328_v24 = vadd.f32 %v5382_v17, %v2215_v62  ;;  %v2233_v62 = vadd.f32 %v5402_v29, %v5323_v56 }
 0x24a   : > { %v2541_v38 = vpop.f32.mrf.mxu1  ;;  %v2667_v55 = vpack.c.bf16 %v2611_v9, %v2607_v8  ;;  %v2429_v45 = vadd.f32 %v2428_v18, %v2316_v58  ;;  %v2540_v43 = vadd.f32 %v2539_v1, %v2427_v60  ;;  %v2614_v30 = vmax.f32 %v2538_v6, 0.0 }
 0x24b   : > { %v2430_v37 = vpop.f32.mrf.mxu0  ;;  %v2223_v8 = vadd.f32 %v5388_v34, %v5323_v56 }
 0x24c   : > { %v2543_v5 = vpop.f32.mrf.mxu1  ;;  %v2542_v52 = vadd.f32 %v2541_v38, %v2429_v45  ;;  %v2431_v16 = vadd.f32 %v2430_v37, %v2318_v44  ;;  %3092 = vmatprep.mubr.bf16.mxu1 %v2667_v55  ;;  %v2615_v61 = vmax.f32 %v2540_v43, 0.0 }
 0x24d   : > { %v2434_v49 = vpop.f32.mrf.mxu0  ;;  %3093 = vmatmul.mubr.bf16.gmra.mxu1 %v2666_v11  ;;  %v2336_v55 = vadd.f32 %v5390_v26, %v2223_v8 }
 0x24e   : > { %v2547_v4 = vpop.f32.mrf.mxu1  ;;  %v2544_v12 = vadd.f32 %v2543_v5, %v2431_v16  ;;  %v2618_v20 = vmax.f32 %v2542_v52, 0.0  ;;  %v2435_v47 = vadd.f32 %v2434_v49, %v5371_v53  ;;  %v2225_v53 = vadd.f32 %v5394_v10, %v5326_v13 }
 0x24f   : > { %v2436_v57 = vpop.f32.mrf.mxu0 }
 0x250   : > { %v2549_v63 = vpop.f32.mrf.mxu1  ;;  %v2619_v21 = vmax.f32 %v2544_v12, 0.0  ;;  %v2437_v28 = vadd.f32 %v2436_v57, %v5378_v22  ;;  %v2670_v40 = vpack.c.bf16 %v2618_v20, %v2614_v30  ;;  %v2548_v22 = vadd.f32 %v2547_v4, %v2435_v47 }
 0x251   : > { %v2438_v48 = vpop.f32.mrf.mxu0  ;;  %v2338_v52 = vadd.f32 %v5396_v50, %v2225_v53 }
 0x252   : > { %v2551_v32 = vpop.f32.mrf.mxu1  ;;  %v2671_v0 = vpack.c.bf16 %v2619_v21, %v2615_v61  ;;  %v2439_v2 = vadd.f32 %v2438_v48, %v2326_v42  ;;  %v2550_v23 = vadd.f32 %v2549_v63, %v2437_v28  ;;  %v2622_v37 = vmax.f32 %v2548_v22, 0.0 }
 0x253   : > { %v2440_v1 = vpop.f32.mrf.mxu0  ;;  %v2346_v28 = vadd.f32 %v5404_v39, %v2233_v62 }
 0x254   : > { %v2553_v58 = vpop.f32.mrf.mxu1  ;;  %v2552_v9 = vadd.f32 %v2551_v32, %v2439_v2  ;;  %v2441_v60 = vadd.f32 %v2440_v1, %v2328_v24  ;;  %3100 = vmatprep.mubr.bf16.mxu1 %v2671_v0  ;;  %v2623_v45 = vmax.f32 %v2550_v23, 0.0  ;;  %v2243_v23 = vadd.f32 %v5416_v46, %v5323_v56 }
 0x255   : > { %v2444_v14 = vpop.f32.mrf.mxu0  ;;  %3101 = vmatmul.mubr.bf16.gmra.mxu1 %v2670_v40 }
 0x256   : > { %v2557_v7 = vpop.f32.mrf.mxu1  ;;  %v2554_v17 = vadd.f32 %v2553_v58, %v2441_v60  ;;  %v2626_v18 = vmax.f32 %v2552_v9, 0.0  ;;  %v2445_v5 = vadd.f32 %v2444_v14, %v5385_v33  ;;  %v2235_v33 = vadd.f32 %v5408_v35, %v5326_v13 }
 0x257   : > { %v2446_v38 = vpop.f32.mrf.mxu0 }
 0x258   : > { %v2559_v44 = vpop.f32.mrf.mxu1  ;;  %v2627_v11 = vmax.f32 %v2554_v17, 0.0  ;;  %v2447_v34 = vadd.f32 %v2446_v38, %v5392_v15  ;;  %v2674_v10 = vpack.c.bf16 %v2626_v18, %v2622_v37  ;;  %v2558_v15 = vadd.f32 %v2557_v7, %v2445_v5 }
 0x259   : > { %v2448_v59 = vpop.f32.mrf.mxu0  ;;  %v2348_v2 = vadd.f32 %v5410_v51, %v2235_v33  ;;  %v2356_v18 = vadd.f32 %v5418_v36, %v2243_v23 }
 0x25a   : > { %v2561_v43 = vpop.f32.mrf.mxu1  ;;  %v2675_v16 = vpack.c.bf16 %v2627_v11, %v2623_v45  ;;  %v2449_v6 = vadd.f32 %v2448_v59, %v2336_v55  ;;  %v2560_v26 = vadd.f32 %v2559_v44, %v2447_v34  ;;  %v2630_v48 = vmax.f32 %v2558_v15, 0.0  ;;  %v5732_v15 = vld [vmem:[#allocation20_spill] sm:$0xff] }
 0x25b   : > { %v2450_v49 = vpop.f32.mrf.mxu0 }
 0x25c   : > { %v2563_v4 = vpop.f32.mrf.mxu1  ;;  %v2562_v12 = vadd.f32 %v2561_v43, %v2449_v6  ;;  %v2451_v20 = vadd.f32 %v2450_v49, %v2338_v52  ;;  %3108 = vmatprep.mubr.bf16.mxu1 %v2675_v16  ;;  %v2631_v30 = vmax.f32 %v2560_v26, 0.0  ;;  %v2253_v16 = vadd.f32 %v5430_v25, %v5323_v56  ;;  %v5733_v56 = vld [vmem:[#allocation21_spill] sm:$0xff] }
 0x25d   : > { %v2454_v57 = vpop.f32.mrf.mxu0  ;;  %3109 = vmatmul.mubr.bf16.gmra.mxu1 %v2674_v10 }
 0x25e   : > { %v2567_v63 = vpop.f32.mrf.mxu1  ;;  %v2564_v50 = vadd.f32 %v2563_v4, %v2451_v20  ;;  %v2634_v42 = vmax.f32 %v2562_v12, 0.0  ;;  %v2455_v32 = vadd.f32 %v2454_v57, %v5399_v31  ;;  %v2245_v31 = vadd.f32 %v5422_v19, %v5326_v13 }
 0x25f   : > { %v2456_v61 = vpop.f32.mrf.mxu0  ;;  %v2366_v57 = vadd.f32 %v5732_v15, %v2253_v16 }
 0x260   : > { %v2569_v21 = vpop.f32.mrf.mxu1  ;;  %v2635_v47 = vmax.f32 %v2564_v50, 0.0  ;;  %v2457_v29 = vadd.f32 %v2456_v61, %v5406_v41  ;;  %v2678_v35 = vpack.c.bf16 %v2634_v42, %v2630_v48  ;;  %v2568_v41 = vadd.f32 %v2567_v63, %v2455_v32  ;;  %v5734_v42 = vld [vmem:[#allocation19_spill] sm:$0xff] }
 0x261   : > { %v2458_v24 = vpop.f32.mrf.mxu0  ;;  %v2358_v37 = vadd.f32 %v5424_v54, %v2245_v31 }
 0x262   : > { %v2571_v0 = vpop.f32.mrf.mxu1  ;;  %v2679_v40 = vpack.c.bf16 %v2635_v47, %v2631_v30  ;;  %v2459_v1 = vadd.f32 %v2458_v24, %v2346_v28  ;;  %v2570_v39 = vadd.f32 %v2569_v21, %v2457_v29  ;;  %v2638_v55 = vmax.f32 %v2568_v41, 0.0  ;;  %v5735_v30 = vld [vmem:[#allocation23_spill] sm:$0xff] }
 0x263   : > { %v2460_v58 = vpop.f32.mrf.mxu0 }
 0x264   : > { %v2573_v8 = vpop.f32.mrf.mxu1  ;;  %v2572_v9 = vadd.f32 %v2571_v0, %v2459_v1  ;;  %v2461_v60 = vadd.f32 %v2460_v58, %v2348_v2  ;;  %3116 = vmatprep.mubr.bf16.mxu1 %v2679_v40  ;;  %v2639_v38 = vmax.f32 %v2570_v39, 0.0 }
 0x265   : > { %v2464_v22 = vpop.f32.mrf.mxu0  ;;  %3117 = vmatmul.mubr.bf16.gmra.mxu1 %v2678_v35 }
 0x266   : > { %v2577_v14 = vpop.f32.mrf.mxu1  ;;  %v2574_v51 = vadd.f32 %v2573_v8, %v2461_v60  ;;  %v2642_v7 = vmax.f32 %v2572_v9, 0.0  ;;  %v2465_v45 = vadd.f32 %v2464_v22, %v5413_v27  ;;  %v5731_v27 = vld [vmem:[#allocation22_spill] sm:$0xff] }
 0x267   : > { %v2466_v53 = vpop.f32.mrf.mxu0  ;;  %v2255_v62 = vadd.f32 %v5731_v27, %v5326_v13 }
 0x268   : > { %v2579_v17 = vpop.f32.mrf.mxu1  ;;  %v2643_v44 = vmax.f32 %v2574_v51, 0.0  ;;  %v2467_v46 = vadd.f32 %v2466_v53, %v5420_v3  ;;  %v2682_v19 = vpack.c.bf16 %v2642_v7, %v2638_v55  ;;  %v2578_v3 = vadd.f32 %v2577_v14, %v2465_v45 }
 0x269   : > { %v2468_v11 = vpop.f32.mrf.mxu0  ;;  %v2368_v47 = vadd.f32 %v5735_v30, %v2255_v62 }
 0x26a   : > { %v2581_v34 = vpop.f32.mrf.mxu1  ;;  %v2683_v5 = vpack.c.bf16 %v2643_v44, %v2639_v38  ;;  %v2469_v59 = vadd.f32 %v2468_v11, %v2356_v18  ;;  %v2580_v36 = vadd.f32 %v2579_v17, %v2467_v46  ;;  %v2646_v50 = vmax.f32 %v2578_v3, 0.0 }
 0x26b   : > { %v2470_v43 = vpop.f32.mrf.mxu0 }
 0x26c   : > { %v2583_v52 = vpop.f32.mrf.mxu1  ;;  %v2582_v6 = vadd.f32 %v2581_v34, %v2469_v59  ;;  %v2471_v10 = vadd.f32 %v2470_v43, %v2358_v37  ;;  %3124 = vmatprep.mubr.bf16.mxu1 %v2683_v5  ;;  %v2647_v63 = vmax.f32 %v2580_v36, 0.0  ;;  %v5509_v59 = vld [vmem:[%s5654_s4] ss:$0 sm:$0xff] }
 0x26d   : > { %v2474_v49 = vpop.f32.mrf.mxu0  ;;  %3125 = vmatmul.mubr.bf16.gmra.mxu1 %v2682_v19 }
 0x26e   : > { %v2587_v4 = vpop.f32.mrf.mxu1  ;;  %v2584_v54 = vadd.f32 %v2583_v52, %v2471_v10  ;;  %v2650_v26 = vmax.f32 %v2582_v6, 0.0  ;;  %v2475_v61 = vadd.f32 %v2474_v49, %v5734_v42 }
 0x26f   : > { %v2476_v12 = vpop.f32.mrf.mxu0 }
 0x270   : > { %v2589_v20 = vpop.f32.mrf.mxu1  ;;  %v2651_v33 = vmax.f32 %v2584_v54, 0.0  ;;  %v2477_v25 = vadd.f32 %v2476_v12, %v5733_v56  ;;  %v2686_v13 = vpack.c.bf16 %v2650_v26, %v2646_v50  ;;  %v2588_v40 = vadd.f32 %v2587_v4, %v2475_v61 }
 0x271   : > { %v2478_v21 = vpop.f32.mrf.mxu0 }
 0x272   : > { %v2591_v28 = vpop.f32.mrf.mxu1  ;;  %v2687_v29 = vpack.c.bf16 %v2651_v33, %v2647_v63  ;;  %v2479_v48 = vadd.f32 %v2478_v21, %v2366_v57  ;;  %v2590_v24 = vadd.f32 %v2589_v20, %v2477_v25  ;;  %v2654_v39 = vmax.f32 %v2588_v40, 0.0 }
 0x273   : > { %v2480_v32 = vpop.f32.mrf.mxu0 }
 0x274   : > { %v2592_v0 = vadd.f32 %v2591_v28, %v2479_v48  ;;  %v2481_v2 = vadd.f32 %v2480_v32, %v2368_v47  ;;  %3132 = vmatprep.mubr.bf16.mxu1 %v2687_v29  ;;  %v2593_v1 = vpop.f32.mrf.mxu1  ;;  %v2655_v8 = vmax.f32 %v2590_v24, 0.0 }
 0x275   : > { %3133 = vmatmul.mubr.bf16.gmra.mxu1 %v2686_v13 }
 0x276   : > { %v2594_v35 = vadd.f32 %v2593_v1, %v2481_v2  ;;  %v2658_v58 = vmax.f32 %v2592_v0, 0.0 }
 0x278   : > { %v2659_v23 = vmax.f32 %v2594_v35, 0.0  ;;  %v2690_v60 = vpack.c.bf16 %v2658_v58, %v2654_v39 }
 0x27a   : > { %v2691_v9 = vpack.c.bf16 %v2659_v23, %v2655_v8 }
 0x27c   : > { %3140 = vmatprep.mubr.bf16.mxu1 %v2691_v9 }
 0x27d   : > { %3141 = vmatmul.mubr.bf16.gmra.mxu1 %v2690_v60 }
 0x285   : > { %v3780_v41 = vpop.f32.mrf.mxu0 }
 0x287   : > { %v3781_v22 = vpop.f32.mrf.mxu0 }
 0x288   : > { %v3782_v5 = vadd.f32 %v3781_v22, %v3780_v41 }
 0x289   : > { %v3783_v14 = vpop.f32.mrf.mxu0 }
 0x28a   : > { %v2990_v16 = vadd.f32 %v3782_v5, %v5509_v59 }
 0x28b   : > { %v3784_v31 = vpop.f32.mrf.mxu0 }
 0x28c   : > { %v3785_v36 = vadd.f32 %v3784_v31, %v3783_v14 }
 0x28d   : > { %v3786_v51 = vpop.f32.mrf.mxu0 }
 0x28e   : > { %v2993_v27 = vadd.f32 %v3785_v36, %v5509_v59 }
 0x28f   : > { %v3787_v7 = vpop.f32.mrf.mxu0 }
 0x290   : > { %v3788_v62 = vadd.f32 %v3787_v7, %v3786_v51 }
 0x291   : > { %v3789_v53 = vpop.f32.mrf.mxu0 }
 0x292   : > { %v2998_v57 = vadd.f32 %v3788_v62, %v5509_v59 }
 0x293   : > { %v3790_v17 = vpop.f32.mrf.mxu0 }
 0x294   : > { %v3791_v63 = vadd.f32 %v3790_v17, %v3789_v53 }
 0x295   : > { %v3792_v18 = vpop.f32.mrf.mxu0 }
 0x296   : > { %v3001_v61 = vadd.f32 %v3791_v63, %v5509_v59 }
 0x297   : > { %v3793_v38 = vpop.f32.mrf.mxu0 }
 0x298   : > { %v3794_v21 = vadd.f32 %v3793_v38, %v3792_v18 }
 0x299   : > { %v3795_v44 = vpop.f32.mrf.mxu0 }
 0x29a   : > { %v3006_v13 = vadd.f32 %v3794_v21, %v5509_v59 }
 0x29b   : > { %v3796_v46 = vpop.f32.mrf.mxu0 }
 0x29c   : > { %v3797_v32 = vadd.f32 %v3796_v46, %v3795_v44 }
 0x29d   : > { %v3798_v55 = vpop.f32.mrf.mxu0 }
 0x29e   : > { %v3009_v35 = vadd.f32 %v3797_v32, %v5509_v59 }
 0x29f   : > { %v3799_v45 = vpop.f32.mrf.mxu0 }
 0x2a0   : > { %v3800_v58 = vadd.f32 %v3799_v45, %v3798_v55 }
 0x2a1   : > { %v3801_v11 = vpop.f32.mrf.mxu0 }
 0x2a2   : > { %v3014_v41 = vadd.f32 %v3800_v58, %v5509_v59 }
 0x2a3   : > { %v3802_v34 = vpop.f32.mrf.mxu0 }
 0x2a4   : > { %v3803_v22 = vadd.f32 %v3802_v34, %v3801_v11 }
 0x2a5   : > { %v5504_v37 = vpop.f32.mrf.mxu0 }
 0x2a6   : > { %v3017_v17 = vadd.f32 %v3803_v22, %v5509_v59 }
 0x2a7   : > { %v3805_v19 = vpop.f32.mrf.mxu0 }
 0x2a8   : > { %v3806_v18 = vadd.f32 %v3805_v19, %v5504_v37 }
 0x2a9   : > { %v3807_v10 = vpop.f32.mrf.mxu0 }
 0x2aa   : > { %v3022_v11 = vadd.f32 %v3806_v18, %v5509_v59 }
 0x2ab   : > { %v3808_v26 = vpop.f32.mrf.mxu0 }
 0x2ac   : > { %v3809_v34 = vadd.f32 %v3808_v26, %v3807_v10 }
 0x2ad   : > { %v3810_v56 = vpop.f32.mrf.mxu0 }
 0x2af   : > { %v3811_v30 = vpop.f32.mrf.mxu0 }
 0x2b0   : > { %v3812_v37 = vadd.f32 %v3811_v30, %v3810_v56 }
 0x2b1   : > { %v3813_v0 = vpop.f32.mrf.mxu0 }
 0x2b2   : > { %v3030_v62 = vadd.f32 %v3812_v37, %v5509_v59 }
 0x2b3   : > { %v3814_v23 = vpop.f32.mrf.mxu0 }
 0x2b4   : > { %v3815_v10 = vadd.f32 %v3814_v23, %v3813_v0 }
 0x2b5   : > { %v3816_v31 = vpop.f32.mrf.mxu0 }
 0x2b7   : > { %v3817_v44 = vpop.f32.mrf.mxu0 }
 0x2b8   : > { %v3818_v63 = vadd.f32 %v3817_v44, %v3816_v31 }
 0x305   : > { %v3844_v43 = vpop.f32.mrf.mxu1 }
 0x307   : > { %v3845_v52 = vpop.f32.mrf.mxu1 }
 0x308   : > { %v3846_v6 = vadd.f32 %v3845_v52, %v3844_v43  ;;  %v3819_v43 = vpop.f32.mrf.mxu0 }
 0x309   : > { %v3847_v3 = vpop.f32.mrf.mxu1 }
 0x30a   : > { %v3087_v49 = vadd.f32 %v3846_v6, %v2990_v16  ;;  %v3025_v6 = vadd.f32 %v3809_v34, %v5509_v59 }
 0x30b   : > { %v3848_v4 = vpop.f32.mrf.mxu1 }
 0x30c   : > { %3149 = vst [vmem:[%s5514_s18] sm:$0xff] %v3087_v49  ;;  %v3849_v54 = vadd.f32 %v3848_v4, %v3847_v3  ;;  %v3820_v3 = vpop.f32.mrf.mxu0 }
 0x30d   : > { %v3850_v12 = vpop.f32.mrf.mxu1  ;;  %v3821_v21 = vadd.f32 %v3820_v3, %v3819_v43 }
 0x30e   : > { %v3090_v20 = vadd.f32 %v3849_v54, %v2993_v27  ;;  %v3822_v26 = vpop.f32.mrf.mxu0 }
 0x30f   : > { %v3851_v15 = vpop.f32.mrf.mxu1 }
 0x310   : > { %3150 = vst [vmem:[%s5514_s18 + $0x8] sm:$0xff] %v3090_v20  ;;  %v3852_v33 = vadd.f32 %v3851_v15, %v3850_v12  ;;  %v3823_v56 = vpop.f32.mrf.mxu0 }
 0x311   : > { %v3853_v25 = vpop.f32.mrf.mxu1  ;;  %v3824_v32 = vadd.f32 %v3823_v56, %v3822_v26 }
 0x312   : > { %v3095_v50 = vadd.f32 %v3852_v33, %v2998_v57  ;;  %v3033_v57 = vadd.f32 %v3815_v10, %v5509_v59  ;;  %v3825_v30 = vpop.f32.mrf.mxu0 }
 0x313   : > { %v3854_v42 = vpop.f32.mrf.mxu1 }
 0x314   : > { %3151 = vst [vmem:[%s5514_s18 + $0x10] sm:$0xff] %v3095_v50  ;;  %v3855_v28 = vadd.f32 %v3854_v42, %v3853_v25  ;;  %v3826_v0 = vpop.f32.mrf.mxu0 }
 0x315   : > { %v3856_v47 = vpop.f32.mrf.mxu1  ;;  %v3827_v58 = vadd.f32 %v3826_v0, %v3825_v30 }
 0x316   : > { %v3098_v29 = vadd.f32 %v3855_v28, %v3001_v61  ;;  %v3038_v61 = vadd.f32 %v3818_v63, %v5509_v59 }
 0x317   : > { %v3857_v48 = vpop.f32.mrf.mxu1 }
 0x318   : > { %3152 = vst [vmem:[%s5514_s18 + $0x18] sm:$0xff] %v3098_v29  ;;  %v3858_v24 = vadd.f32 %v3857_v48, %v3856_v47 }
 0x319   : > { %v3859_v2 = vpop.f32.mrf.mxu1 }
 0x31a   : > { %v3103_v40 = vadd.f32 %v3858_v24, %v3006_v13  ;;  %v3041_v13 = vadd.f32 %v3821_v21, %v5509_v59 }
 0x31b   : > { %v3860_v1 = vpop.f32.mrf.mxu1 }
 0x31c   : > { %3153 = vst [vmem:[%s5514_s18 + $0x20] sm:$0xff] %v3103_v40  ;;  %v3861_v8 = vadd.f32 %v3860_v1, %v3859_v2 }
 0x31d   : > { %v3862_v39 = vpop.f32.mrf.mxu1 }
 0x31e   : > { %v3106_v9 = vadd.f32 %v3861_v8, %v3009_v35  ;;  %v3046_v35 = vadd.f32 %v3824_v32, %v5509_v59 }
 0x31f   : > { %v3863_v60 = vpop.f32.mrf.mxu1 }
 0x320   : > { %3154 = vst [vmem:[%s5514_s18 + $0x28] sm:$0xff] %v3106_v9  ;;  %v3864_v14 = vadd.f32 %v3863_v60, %v3862_v39  ;;  %v3049_v60 = vadd.f32 %v3827_v58, %v5509_v59 }
 0x321   : > { %v3865_v51 = vpop.f32.mrf.mxu1 }
 0x322   : > { %v3111_v7 = vadd.f32 %v3864_v14, %v3014_v41 }
 0x323   : > { %v3866_v53 = vpop.f32.mrf.mxu1 }
 0x324   : > { %3155 = vst [vmem:[%s5514_s18 + $0x30] sm:$0xff] %v3111_v7  ;;  %v3867_v38 = vadd.f32 %v3866_v53, %v3865_v51 }
 0x325   : > { %v3868_v46 = vpop.f32.mrf.mxu1 }
 0x326   : > { %v3114_v55 = vadd.f32 %v3867_v38, %v3017_v17 }
 0x327   : > { %v3869_v45 = vpop.f32.mrf.mxu1 }
 0x328   : > { %3156 = vst [vmem:[%s5514_s18 + $0x38] sm:$0xff] %v3114_v55  ;;  %v3870_v5 = vadd.f32 %v3869_v45, %v3868_v46 }
 0x329   : > { %v3871_v52 = vpop.f32.mrf.mxu1 }
 0x32a   : > { %v3119_v16 = vadd.f32 %v3870_v5, %v3022_v11 }
 0x32b   : > { %v3872_v36 = vpop.f32.mrf.mxu1 }
 0x32c   : > { %3157 = vst [vmem:[%s5514_s18 + $0x40] sm:$0xff] %v3119_v16  ;;  %v3873_v19 = vadd.f32 %v3872_v36, %v3871_v52 }
 0x32d   : > { %v3874_v49 = vpop.f32.mrf.mxu1 }
 0x32e   : > { %v3122_v4 = vadd.f32 %v3873_v19, %v3025_v6 }
 0x32f   : > { %v3875_v27 = vpop.f32.mrf.mxu1 }
 0x330   : > { %3158 = vst [vmem:[%s5514_s18 + $0x48] sm:$0xff] %v3122_v4  ;;  %v3876_v54 = vadd.f32 %v3875_v27, %v3874_v49 }
 0x331   : > { %v3877_v12 = vpop.f32.mrf.mxu1 }
 0x332   : > { %v3127_v20 = vadd.f32 %v3876_v54, %v3030_v62 }
 0x333   : > { %v3878_v15 = vpop.f32.mrf.mxu1 }
 0x334   : > { %3159 = vst [vmem:[%s5514_s18 + $0x50] sm:$0xff] %v3127_v20  ;;  %v3879_v33 = vadd.f32 %v3878_v15, %v3877_v12 }
 0x335   : > { %v3880_v25 = vpop.f32.mrf.mxu1 }
 0x336   : > { %v3130_v50 = vadd.f32 %v3879_v33, %v3033_v57 }
 0x337   : > { %v3881_v42 = vpop.f32.mrf.mxu1 }
 0x338   : > { %3160 = vst [vmem:[%s5514_s18 + $0x58] sm:$0xff] %v3130_v50  ;;  %v3882_v28 = vadd.f32 %v3881_v42, %v3880_v25 }
 0x339   : > { %v3883_v47 = vpop.f32.mrf.mxu1 }
 0x33a   : > { %v3135_v29 = vadd.f32 %v3882_v28, %v3038_v61 }
 0x33b   : > { %v3884_v48 = vpop.f32.mrf.mxu1 }
 0x33c   : > { %3161 = vst [vmem:[%s5514_s18 + $0x60] sm:$0xff] %v3135_v29  ;;  %v3885_v24 = vadd.f32 %v3884_v48, %v3883_v47 }
 0x33d   : > { %v3886_v2 = vpop.f32.mrf.mxu1 }
 0x33e   : > { %v3138_v40 = vadd.f32 %v3885_v24, %v3041_v13 }
 0x33f   : > { %v3887_v1 = vpop.f32.mrf.mxu1 }
 0x340   : > { %3162 = vst [vmem:[%s5514_s18 + $0x68] sm:$0xff] %v3138_v40  ;;  %v3888_v8 = vadd.f32 %v3887_v1, %v3886_v2 }
 0x341   : > { %v3889_v23 = vpop.f32.mrf.mxu1 }
 0x342   : > { %v3143_v39 = vadd.f32 %v3888_v8, %v3046_v35 }
 0x343   : > { %v3890_v9 = vpop.f32.mrf.mxu1 }
 0x344   : > { %3163 = vst [vmem:[%s5514_s18 + $0x70] sm:$0xff] %v3143_v39  ;;  %v3891_v41 = vadd.f32 %v3890_v9, %v3889_v23  ;;  %3171 = sbr.rel (!%p5736_p9) target bundleno = 882 (0x372), region = 60 }
 0x346   : > { %v3146_v22 = vadd.f32 %v3891_v41, %v3049_v60 }
 0x348   : > { %3164 = vst [vmem:[%s5514_s18 + $0x78] sm:$0xff] %v3146_v22 }
 0x349   : > { %s5747_s21 = smov (!%p3174_p5, %s3173_s21), 16 }
 0x34a   : > { %s3746_s16 = sshll.u32 %s5747_s21, 7 }
 0x34b   : > { %p3749_p12 = scmp.eq.s32.totalorder %s3746_s16, 0 }
 0x34c   : > { %s5560_s29 = sshrl.u32 (!%p3749_p12), %s5747_s21, 4 }
 0x34d   : > { %3182 = sbr.rel (%p3749_p12) target bundleno = 882 (0x372), region = 64  ;;  %p3750_p1 = scmp.le.s32.totalorder (!%p3749_p12), %s5560_s29, 0 }
 0x352   : > { %3407 = sbr.rel (%p3750_p1) target bundleno = 865 (0x361), region = 146  ;;  %s5737_s22 = smov (!%p3750_p1), %s5554_s15 }
 0x353   : > { %s5738_s8 = smov (!%p3750_p1), %s5514_s18  ;;  %s5569_s12 = smov (!%p3750_p1), 0  }
 0x354   : > { %s5571_s27 = smov (!%p3750_p1), 0  }
 0x357 LB: >> { %v3275_v59 = vld [vmem:[%s4542_s8] sm:$0xff]  ;;  %v3277_v14 = vld [vmem:[%s4542_s8 + $0x8] sm:$0xff]  ;;  %v3279_v31 = vld [vmem:[%s4542_s8 + $0x10] sm:$0xff]  ;;  %s3307_s25 = sadd.s32 1, %s4546_s12  ;;  %s3269_s27 = sadd.s32 1, %s4550_s27   ;;  %s4550_s27 = sphi %s5571_s27, %s3269_s27   ;;  %s4546_s12 = sphi %s5569_s12, %s5739_s12   ;;  %s4542_s8 = sphi %s5738_s8, %s3312_s8   ;;  %s4538_s22 = sphi %s5737_s22, %s3313_s22  }
 0x358   : >> { %3276 = vst [vmem:[%s4538_s22] sm:$0xff] %v3275_v59  ;;  %3278 = vst [vmem:[%s4538_s22 + $0x8] sm:$0xff] %v3277_v14  ;;  %v3281_v51 = vld [vmem:[%s4542_s8 + $0x18] sm:$0xff]  ;;  %v3283_v7 = vld [vmem:[%s4542_s8 + $0x20] sm:$0xff]  ;;  %p3308_p8 = scmp.ge.s32.totalorder %s3307_s25, %s5560_s29  ;;  %p3268_p10 = scmp.ge.s32.totalorder %s3269_s27, %s5560_s29 }
 0x359   : >> { %3280 = vst [vmem:[%s4538_s22 + $0x10] sm:$0xff] %v3279_v31  ;;  %v3285_v53 = vld [vmem:[%s4542_s8 + $0x28] sm:$0xff]  ;;  %3282 = vst [vmem:[%s4538_s22 + $0x18] sm:$0xff] %v3281_v51  ;;  %v3287_v17 = vld [vmem:[%s4542_s8 + $0x30] sm:$0xff] }
 0x35a   : >> { %3284 = vst [vmem:[%s4538_s22 + $0x20] sm:$0xff] %v3283_v7  ;;  %3286 = vst [vmem:[%s4538_s22 + $0x28] sm:$0xff] %v3285_v53  ;;  %v3289_v18 = vld [vmem:[%s4542_s8 + $0x38] sm:$0xff]  ;;  %v3291_v38 = vld [vmem:[%s4542_s8 + $0x40] sm:$0xff]  ;;  %s5749_s25 = smov (%p3308_p8, %s3307_s25), 0 }
 0x35b   : >> { %3288 = vst [vmem:[%s4538_s22 + $0x30] sm:$0xff] %v3287_v17  ;;  %3290 = vst [vmem:[%s4538_s22 + $0x38] sm:$0xff] %v3289_v18  ;;  %v3293_v44 = vld [vmem:[%s4542_s8 + $0x48] sm:$0xff]  ;;  %v3295_v46 = vld [vmem:[%s4542_s8 + $0x50] sm:$0xff]  ;;  %s3751_s6 = sshll.u32 %s5749_s25, 7  ;;  %s5739_s12 = smov %s5749_s25 }
 0x35c   : >> { %3292 = vst [vmem:[%s4538_s22 + $0x40] sm:$0xff] %v3291_v38  ;;  %v3297_v55 = vld [vmem:[%s4542_s8 + $0x58] sm:$0xff]  ;;  %3294 = vst [vmem:[%s4538_s22 + $0x48] sm:$0xff] %v3293_v44  ;;  %v3299_v45 = vld [vmem:[%s4542_s8 + $0x60] sm:$0xff]  ;;  %3271 = sbr.rel (!%p3268_p10) target bundleno = 855 (0x357), region = 152 }
 0x35d   : >> { %3296 = vst [vmem:[%s4538_s22 + $0x50] sm:$0xff] %v3295_v46  ;;  %3298 = vst [vmem:[%s4538_s22 + $0x58] sm:$0xff] %v3297_v55  ;;  %v3301_v11 = vld [vmem:[%s4542_s8 + $0x68] sm:$0xff]  ;;  %v3303_v34 = vld [vmem:[%s4542_s8 + $0x70] sm:$0xff] }
 0x35e   : >> { %3300 = vst [vmem:[%s4538_s22 + $0x60] sm:$0xff] %v3299_v45  ;;  %3302 = vst [vmem:[%s4538_s22 + $0x68] sm:$0xff] %v3301_v11  ;;  %v3305_v5 = vld [vmem:[%s4542_s8 + $0x78] sm:$0xff]  ;;  %s3312_s8 = scalar_lea.vmem %s5514_s18, %s3751_s6 [#allocation9]  }
 0x35f   : >> { %3304 = vst [vmem:[%s4538_s22 + $0x70] sm:$0xff] %v3303_v34  ;;  %3306 = vst [vmem:[%s4538_s22 + $0x78] sm:$0xff] %v3305_v5  ;;  %s3313_s22 = scalar_lea.vmem %s5554_s15, %s3751_s6  }
 0x361 PF: > { %s5629_s9 = sand.u32 15, %s5747_s21   ;;  %s3762_s11 = sshll.u32 %s5560_s29, 7 }
 0x362   : > { %s3318_s13 = scalar_lea.vmem %s5514_s18, %s3762_s11 [#allocation9]   ;;  %s3320_s28 = scalar_lea.vmem %s5554_s15, %s3762_s11  }
 0x363   : > { %p3756_p11 = scmp.le.s32.totalorder %s5629_s9, 0 }
 0x364   : > { %s4552_s30 = smov (!%p3756_p11), %s3320_s28   ;;  %s4556_s17 = smov (!%p3756_p11), %s3318_s13  }
 0x365   : > { %3421 = sbr.rel (%p3756_p11) target bundleno = 882 (0x372), region = 157  ;;  %s4560_s24 = smov (!%p3756_p11), 0  }
 0x366   : > { %s4564_s7 = smov (!%p3756_p11), 0  }
 0x36a LB: >> { %v3330_v43 = vld [vmem:[%s4558_s17] sm:$0xff]  ;;  %s3332_s21 = sadd.s32 1, %s4562_s24  ;;  %s3324_s7 = sadd.s32 1, %s4566_s7   ;;  %s4566_s7 = sphi %s4564_s7, %s3324_s7   ;;  %s4562_s24 = sphi %s4560_s24, %s4561_s24   ;;  %s4558_s17 = sphi %s4556_s17, %s3337_s17   ;;  %s4554_s30 = sphi %s4552_s30, %s3338_s30  }
 0x36b   : >> { %3331 = vst [vmem:[%s4554_s30] sm:$0xff] %v3330_v43  ;;  %p3333_p13 = scmp.ge.s32.totalorder %s3332_s21, %s5629_s9  ;;  %p3323_p0 = scmp.ge.s32.totalorder %s3324_s7, %s5629_s9 }
 0x36d   : >> { %s5751_s21 = smov (%p3333_p13, %s3332_s21), 0  ;;  %3326 = sbr.rel (!%p3323_p0) target bundleno = 874 (0x36a), region = 163 }
 0x36e   : >> { %s3757_s18 = sshll.u32 %s5751_s21, 3  ;;  %s4561_s24 = smov %s5751_s21  }
 0x36f   : >> { %s3337_s17 = scalar_lea.vmem %s3318_s13, %s3757_s18 [#allocation9]   ;;  %s3338_s30 = scalar_lea.vmem %s3320_s28, %s3757_s18  }
 0x372 PF: > { %p17_p2 = scmp.ge.s32.totalorder %s4631_s23, 4   ;;  %s5740_s18 = smov %s4526_s19 }
 0x373   : > { %s5741_s19 = smov %s4530_s20  ;;  %s5742_s20 = smov %s4641_s26 }
 0x374   : > { %s5743_s21 = smov %s4631_s23  ;;  %19 = sbr.rel (!%p17_p2) target bundleno = 5 (0x5), region = 174 }
 0x379   :  { %3354 = vsyncpa [#allocation3], 1 }
 0x37a   :  { %3356 = vsyncpa [#allocation3 + $0x1], 1 }
 0x37b   :  { %3357 = vsyncpa [#allocation5], 1 }
 0x37c   :  { %3358 = vsyncpa [#allocation8], 1 }

</bundles_post_ra>
